<compile_context>
chip_gen: v5e
topology: v5e:2x2
jax: 0.10.0
libtpu: 0.0.40
codegen_flags: <defaults>
</compile_context>

<pallas_src>
import jax
import jax.numpy as jnp
import numpy as np
from jax.experimental import pallas as pl
from jax.experimental.pallas import tpu as pltpu


# ----------------------------- Pallas kernels ------------------------------

def _conv_relu_kernel(p_ref, w_ref, b_ref, o_ref):
    # o = relu(P @ W_blockdiag + b), lane-dense (last dim = 128)
    acc = jnp.dot(p_ref[...], w_ref[...], preferred_element_type=jnp.float32)
    o_ref[...] = jnp.maximum(acc + b_ref[...], 0.0)


def _conv_relu_stats_kernel(p_ref, w_ref, b_ref, y_ref, stats_ref):
    # Same as above, but also accumulate per-lane sum / sum-of-squares for BatchNorm.
    # The stats block index depends only on the outer ("parallel") grid axis, so it stays
    # resident across the inner "arbitrary" reduction axis (classic accumulator pattern).
    @pl.when(pl.program_id(1) == 0)
    def _init():
        stats_ref[...] = jnp.zeros_like(stats_ref)

    acc = jnp.dot(p_ref[...], w_ref[...], preferred_element_type=jnp.float32)
    acc = jnp.maximum(acc + b_ref[...], 0.0)
    y_ref[...] = acc

    s = jnp.sum(acc, axis=0, keepdims=True)          # (1, 128)
    q = jnp.sum(acc * acc, axis=0, keepdims=True)    # (1, 128)
    stats_ref[...] += jnp.concatenate([s, q], axis=0)[None]   # (1, 2, 128)


def _bn_apply_kernel(y_ref, scale_ref, shift_ref, o_ref):
    # Lane-dense elementwise normalize: y * scale + shift
    o_ref[...] = y_ref[...] * scale_ref[...] + shift_ref[...]


# ------------------------------ pallas_call wrappers -------------------------

_VMEM_LIMIT = 48 * 1024 * 1024   # explicit budget: stays under v7x's 64 MiB physical VMEM


def conv_relu_dense(p_dense, w_big, b_big, tile):
    rp, kd = p_dense.shape
    lane = w_big.shape[1]
    grid_m = rp // tile
    return pl.pallas_call(
        _conv_relu_kernel,
        grid=(grid_m,),
        in_specs=[
            pl.BlockSpec((tile, kd), lambda i: (i, 0)),
            pl.BlockSpec((kd, lane), lambda i: (0, 0)),   # pinned: DMA'd once
            pl.BlockSpec((1, lane), lambda i: (0, 0)),    # pinned
        ],
        out_specs=pl.BlockSpec((tile, lane), lambda i: (i, 0)),
        out_shape=jax.ShapeDtypeStruct((rp, lane), jnp.float32),
        compiler_params=pltpu.CompilerParams(
            dimension_semantics=("parallel",),
            vmem_limit_bytes=_VMEM_LIMIT),
    )(p_dense, w_big, b_big)


def conv_relu_stats_dense(p_dense, w_big, b_big, tile, n_outer):
    rp, kd = p_dense.shape
    lane = w_big.shape[1]
    grid_m = rp // tile
    n_inner = grid_m // n_outer
    return pl.pallas_call(
        _conv_relu_stats_kernel,
        grid=(n_outer, n_inner),
        in_specs=[
            pl.BlockSpec((tile, kd), lambda s, t: (s * n_inner + t, 0)),
            pl.BlockSpec((kd, lane), lambda s, t: (0, 0)),   # pinned
            pl.BlockSpec((1, lane), lambda s, t: (0, 0)),    # pinned
        ],
        out_specs=(
            pl.BlockSpec((tile, lane), lambda s, t: (s * n_inner + t, 0)),
            pl.BlockSpec((1, 2, lane), lambda s, t: (s, 0, 0)),   # per-outer partial stats
        ),
        out_shape=(
            jax.ShapeDtypeStruct((rp, lane), jnp.float32),
            jax.ShapeDtypeStruct((n_outer, 2, lane), jnp.float32),
        ),
        compiler_params=pltpu.CompilerParams(
            dimension_semantics=("parallel", "arbitrary"),
            vmem_limit_bytes=_VMEM_LIMIT),
    )(p_dense, w_big, b_big)


def bn_apply_dense(y_dense, scale_l, shift_l, tile):
    rp, lane = y_dense.shape
    grid_m = rp // tile
    return pl.pallas_call(
        _bn_apply_kernel,
        grid=(grid_m,),
        in_specs=[
            pl.BlockSpec((tile, lane), lambda i: (i, 0)),
            pl.BlockSpec((1, lane), lambda i: (0, 0)),   # pinned
            pl.BlockSpec((1, lane), lambda i: (0, 0)),   # pinned
        ],
        out_specs=pl.BlockSpec((tile, lane), lambda i: (i, 0)),
        out_shape=jax.ShapeDtypeStruct((rp, lane), jnp.float32),
        compiler_params=pltpu.CompilerParams(
            dimension_semantics=("parallel",),
            vmem_limit_bytes=_VMEM_LIMIT),
    )(y_dense, scale_l, shift_l)


# ------------------------------ JAX glue ------------------------------------

_ROW_TILE_TARGET = 512   # dense rows per grid step (review: 512-1024 rows ~85% of roofline)
_ROW_MULT = 8            # f32 sublane granularity


def _round_up(x, m):
    return (x + m - 1) // m * m


def _cdiv(a, b):
    return -(-a // b)


def _next_pow2(x):
    return 1 << (max(1, x) - 1).bit_length()


def _pick_tile(rows, target=_ROW_TILE_TARGET, mult=_ROW_MULT):
    # Big tiles for big problems; for small problems aim for ~2 tiles so the grid has
    # >=2 parallel steps (v7x megacore).
    if rows >= 2 * target:
        return target
    return max(mult, _round_up(max(1, (rows + 1) // 2), mult))


def _pad_axis(a, axis, new_size):
    pad = [(0, 0)] * a.ndim
    pad[axis] = (0, new_size - a.shape[axis])
    return jnp.pad(a, pad)


def im2col(x, stride, ksize=3, pad=1):
    # x: (N, H, W, C) -> (N*Ho*Wo, ksize*ksize*C), feature order (kh, kw, c)
    n, h, w, c = x.shape
    xp = jnp.pad(x, ((0, 0), (pad, pad), (pad, pad), (0, 0)))
    ho = (h + 2 * pad - ksize) // stride + 1
    wo = (w + 2 * pad - ksize) // stride + 1
    cols = []
    for kh in range(ksize):
        for kw in range(ksize):
            patch = jax.lax.slice(
                xp,
                (0, kh, kw, 0),
                (n, kh + stride * (ho - 1) + 1, kw + stride * (wo - 1) + 1, c),
                (1, stride, stride, 1),
            )
            cols.append(patch)
    cols = jnp.concatenate(cols, axis=-1)  # (N, Ho, Wo, 9*C)
    return cols.reshape(n * ho * wo, ksize * ksize * c), ho, wo


def _weight_to_mat(w):
    # PyTorch conv weight (Cout, Cin, kh, kw) -> (kh*kw*Cin, Cout), matching im2col order
    c_out, c_in, kh, kw = w.shape
    return jnp.transpose(w, (2, 3, 1, 0)).reshape(kh * kw * c_in, c_out)


def _densify(patches, w_mat, b, fold, row_multiple):
    # Fold `fold` consecutive patch rows into one lane-dense row; build block-diagonal
    # weight kron(I_fold, W) and tiled bias so the kernel output last dim is fold*C_out.
    # The per-pixel feature dim is zero-padded so the folded contraction dim (fold*k) is
    # a multiple of 128 (unmasked loads / full MXU contraction groups).
    m, k = patches.shape
    c_out = w_mat.shape[1]
    k_pad = _round_up(k, max(1, 128 // fold))
    if k_pad != k:
        patches = jnp.pad(patches, ((0, 0), (0, k_pad - k)))
        w_mat = jnp.pad(w_mat, ((0, k_pad - k), (0, 0)))
    r = _cdiv(m, fold)
    rp = _round_up(r, row_multiple)
    mp = rp * fold
    p_dense = jnp.pad(patches, ((0, mp - m), (0, 0))).reshape(rp, fold * k_pad)
    p_dense = p_dense.astype(jnp.float32)     # f32 MXU operands (accuracy vs f32 reference)
    w_big = jnp.kron(jnp.eye(fold, dtype=jnp.float32), w_mat.astype(jnp.float32))
    b_big = jnp.tile(b, fold).reshape(1, fold * c_out).astype(jnp.float32)
    return p_dense, w_big, b_big, rp, mp


def conv_block_forward(x_nchw, w1, b1, w2, b2, gamma, beta, eps=1e-5):
    x = jnp.transpose(x_nchw, (0, 2, 3, 1))   # NCHW -> NHWC
    n = x.shape[0]
    c_out = w1.shape[0]

    # Lane-dense fold: pad out-channels up to the next power of two (a divisor of 128) so
    # the kernel output last dim is always a full 128-lane vreg (no masked partial stores).
    c_out_p = _next_pow2(c_out) if c_out <= 128 else _round_up(c_out, 128)
    fold = max(1, 128 // c_out_p)
    lane = fold * c_out_p

    w1p = _pad_axis(w1, 0, c_out_p)
    b1p = _pad_axis(b1, 0, c_out_p)
    w2p = _pad_axis(_pad_axis(w2, 0, c_out_p), 1, c_out_p)
    b2p = _pad_axis(b2, 0, c_out_p)
    gammap = _pad_axis(gamma, 0, c_out_p)
    betap = _pad_axis(beta, 0, c_out_p)

    # ---- Conv2d(in, out, 3, stride=2, pad=1) + ReLU  (Pallas, tiled matmul) ----
    p1, ho1, wo1 = im2col(x, stride=2)
    m1 = p1.shape[0]
    r1 = _cdiv(m1, fold)
    tile1 = _pick_tile(r1)
    p1d, w1_big, b1_big, rp1, _ = _densify(p1, _weight_to_mat(w1p), b1p, fold, tile1)
    y1d = conv_relu_dense(p1d, w1_big, b1_big, tile1)                 # (rp1, lane) f32
    y1 = y1d.reshape(rp1 * fold, c_out_p)[:m1].reshape(n, ho1, wo1, c_out_p)

    # ---- Conv2d(out, out, 3, pad=1) + ReLU + per-tile BN partial stats (Pallas) ----
    p2, ho2, wo2 = im2col(y1, stride=1)
    m2 = p2.shape[0]
    r2 = _cdiv(m2, fold)
    tile2 = _pick_tile(r2)
    n_outer = 2   # always give the stats pass an even parallel split (v7x megacore);
    p2d, w2_big, b2_big, rp2, mp2 = _densify(p2, _weight_to_mat(w2p), b2p, fold,
                                             n_outer * tile2)
    y2d, stats = conv_relu_stats_dense(p2d, w2_big, b2_big, tile2, n_outer)

    # ---- finalize BatchNorm2d stats (training mode: biased var over N,H,W) ----
    tot = stats.sum(axis=0).reshape(2, fold, c_out_p).sum(axis=1)     # (2, C_out_p)
    rb = jnp.maximum(b2p, 0.0)      # zero-padded patch rows contribute exactly relu(b2)
    n_pad = mp2 - m2
    ch_sum = tot[0] - n_pad * rb
    ch_sq = tot[1] - n_pad * rb * rb
    mean = ch_sum / m2
    var = jnp.maximum(ch_sq / m2 - mean * mean, 0.0)
    scale = gammap * jax.lax.rsqrt(var + eps)
    shift = betap - mean * scale
    scale_l = jnp.tile(scale, fold).reshape(1, lane)
    shift_l = jnp.tile(shift, fold).reshape(1, lane)

    # ---- BatchNorm apply (Pallas, lane-dense elementwise pass) ----
    outd = bn_apply_dense(y2d, scale_l, shift_l, tile2)               # (rp2, lane)
    out = outd.reshape(rp2 * fold, c_out_p)[:m2].reshape(n, ho2, wo2, c_out_p)[..., :c_out]

    # TODO(synk): nn.Dropout2d is only appended when drop_rate > 0 (default 0) — omitted.
    # TODO(synk): im2col gather + final NHWC->NCHW transpose still run in XLA (wrapper);
    # fusing them into the kernels (halo DMA / layout-aware stores) is the remaining
    # HBM-traffic item from the performance review.
    return jnp.transpose(out, (0, 3, 1, 2))   # NHWC -> NCHW


# --------------------------- pure-JAX reference ------------------------------

def reference_forward(x, w1, b1, w2, b2, gamma, beta):
    dn = jax.lax.conv_dimension_numbers(x.shape, w1.shape, ("NCHW", "OIHW", "NCHW"))
    hp = jax.lax.Precision.HIGHEST
    y = jax.lax.conv_general_dilated(x, w1, (2, 2), ((1, 1), (1, 1)),
                                     dimension_numbers=dn, precision=hp)
    y = jax.nn.relu(y + b1[None, :, None, None])
    y = jax.lax.conv_general_dilated(y, w2, (1, 1), ((1, 1), (1, 1)),
                                     dimension_numbers=dn, precision=hp)
    y = jax.nn.relu(y + b2[None, :, None, None])
    mean = jnp.mean(y, axis=(0, 2, 3), keepdims=True)
    var = jnp.var(y, axis=(0, 2, 3), keepdims=True)
    y = (y - mean) * jax.lax.rsqrt(var + 1e-5)
    return gamma[None, :, None, None] * y + beta[None, :, None, None]


# --------------------------------- main --------------------------------------

if __name__ == "__main__":
    N, C_IN, H, W = 2, 4, 32, 32
    C_OUT = 8

    key = jax.random.PRNGKey(0)
    k1, k2, k3, k4, k5 = jax.random.split(key, 5)
    x = jax.random.normal(k1, (N, C_IN, H, W), jnp.float32)
    w1 = jax.random.normal(k2, (C_OUT, C_IN, 3, 3), jnp.float32) * 0.1
    b1 = jax.random.normal(k3, (C_OUT,), jnp.float32) * 0.1
    w2 = jax.random.normal(k4, (C_OUT, C_OUT, 3, 3), jnp.float32) * 0.1
    b2 = jax.random.normal(k5, (C_OUT,), jnp.float32) * 0.1
    gamma = jnp.ones((C_OUT,), jnp.float32)   # BatchNorm2d affine init
    beta = jnp.zeros((C_OUT,), jnp.float32)

    fwd = jax.jit(conv_block_forward)
    out = jax.block_until_ready(fwd(x, w1, b1, w2, b2, gamma, beta))

    ref = reference_forward(x, w1, b1, w2, b2, gamma, beta)
    # f32 MXU operands + f32 accumulation/BN math => tight agreement with the f32 reference
    np.testing.assert_allclose(np.asarray(out), np.asarray(ref), rtol=1e-2, atol=1e-2)

    print("KERNEL_OK")
</pallas_src>

<mosaic_0001>
module attributes {stable_mosaic.version = 11 : i64} {
  func.func @_conv_relu_kernel(%arg0: i32, %arg1: memref<16x640xf32, #tpu.memory_space<vmem>>, %arg2: memref<640x128xf32, #tpu.memory_space<vmem>>, %arg3: memref<1x128xf32, #tpu.memory_space<vmem>>, %arg4: memref<16x128xf32, #tpu.memory_space<vmem>>) attributes {dimension_semantics = [#tpu.dimension_semantics<parallel>], iteration_bounds = array<i64: 2>, scalar_prefetch = 0 : i64, scratch_operands = 0 : i64, tpu.core_type = #tpu.core_type<tc>, window_params = [{transform_indices = @transform_0, window_bounds = array<i64: 16, 640>}, {pipeline_mode = #tpu.pipeline_mode<synchronous>, transform_indices = @transform_1, window_bounds = array<i64: 640, 128>}, {pipeline_mode = #tpu.pipeline_mode<synchronous>, transform_indices = @transform_2, window_bounds = array<i64: 1, 128>}, {transform_indices = @transform_3, window_bounds = array<i64: 16, 128>}]} {
    %c0 = arith.constant 0 : index
    %c0_0 = arith.constant 0 : index
    %0 = vector.load %arg1[%c0, %c0_0] : memref<16x640xf32, #tpu.memory_space<vmem>>, vector<16x640xf32>
    %c0_1 = arith.constant 0 : index
    %c0_2 = arith.constant 0 : index
    %1 = vector.load %arg2[%c0_1, %c0_2] : memref<640x128xf32, #tpu.memory_space<vmem>>, vector<640x128xf32>
    %cst = arith.constant dense<0.000000e+00> : vector<16x128xf32>
    %2 = tpu.matmul %0, %1, %cst {dimension_numbers = #tpu.dot_dimension_numbers<[1], [0], [0], [1], [0, 0, 1, 1], [], []>} : vector<16x640xf32>, vector<640x128xf32>, vector<16x128xf32> -> vector<16x128xf32>
    %c0_3 = arith.constant 0 : index
    %c0_4 = arith.constant 0 : index
    %3 = vector.load %arg3[%c0_3, %c0_4] : memref<1x128xf32, #tpu.memory_space<vmem>>, vector<1x128xf32>
    %4 = vector.broadcast %3 : vector<1x128xf32> to vector<16x128xf32>
    %5 = arith.addf %2, %4 : vector<16x128xf32>
    %cst_5 = arith.constant 0.000000e+00 : f32
    %6 = vector.broadcast %cst_5 : f32 to vector<16x128xf32>
    %7 = arith.maximumf %5, %6 : vector<16x128xf32>
    %c0_6 = arith.constant 0 : index
    %c0_7 = arith.constant 0 : index
    %8 = vector.load %arg4[%c0_6, %c0_7] : memref<16x128xf32, #tpu.memory_space<vmem>>, vector<16x128xf32>
    tpu.vector_store %arg4[%c0_6, %c0_7], %7 {strides = array<i32>} : memref<16x128xf32, #tpu.memory_space<vmem>>, vector<16x128xf32>,
    return
  }
  func.func @transform_0(%arg0: i32) -> (i32, i32) {
    %c0_i32 = arith.constant 0 : i32
    %c0_i32_0 = arith.constant 0 : i32
    return %arg0, %c0_i32 : i32, i32
  }
  func.func @transform_1(%arg0: i32) -> (i32, i32) {
    %c0_i32 = arith.constant 0 : i32
    %c0_i32_0 = arith.constant 0 : i32
    %c0_i32_1 = arith.constant 0 : i32
    return %c0_i32, %c0_i32_0 : i32, i32
  }
  func.func @transform_2(%arg0: i32) -> (i32, i32) {
    %c0_i32 = arith.constant 0 : i32
    %c0_i32_0 = arith.constant 0 : i32
    %c0_i32_1 = arith.constant 0 : i32
    return %c0_i32, %c0_i32_0 : i32, i32
  }
  func.func @transform_3(%arg0: i32) -> (i32, i32) {
    %c0_i32 = arith.constant 0 : i32
    %c0_i32_0 = arith.constant 0 : i32
    return %arg0, %c0_i32 : i32, i32
  }
}

module attributes {stable_mosaic.version = 11 : i64} {
  func.func @_conv_relu_stats_kernel(%arg0: i32, %arg1: i32, %arg2: memref<16x1152xf32, #tpu.memory_space<vmem>>, %arg3: memref<1152x128xf32, #tpu.memory_space<vmem>>, %arg4: memref<1x128xf32, #tpu.memory_space<vmem>>, %arg5: memref<16x128xf32, #tpu.memory_space<vmem>>, %arg6: memref<1x2x128xf32, #tpu.memory_space<vmem>>) attributes {dimension_semantics = [#tpu.dimension_semantics<parallel>, #tpu.dimension_semantics<arbitrary>], iteration_bounds = array<i64: 2, 1>, scalar_prefetch = 0 : i64, scratch_operands = 0 : i64, tpu.core_type = #tpu.core_type<tc>, window_params = [{transform_indices = @transform_0, window_bounds = array<i64: 16, 1152>}, {pipeline_mode = #tpu.pipeline_mode<synchronous>, transform_indices = @transform_1, window_bounds = array<i64: 1152, 128>}, {pipeline_mode = #tpu.pipeline_mode<synchronous>, transform_indices = @transform_2, window_bounds = array<i64: 1, 128>}, {transform_indices = @transform_3, window_bounds = array<i64: 16, 128>}, {transform_indices = @transform_4, window_bounds = array<i64: 1, 2, 128>}]} {
    %c0_i32 = arith.constant 0 : i32
    %0 = arith.cmpi eq, %arg1, %c0_i32 : i32
    %1 = arith.extui %0 : i1 to i32
    %c0_i32_0 = arith.constant 0 : i32
    %2 = arith.cmpi ne, %1, %c0_i32_0 : i32
    scf.if %2 {
      %cst_17 = arith.constant 0.000000e+00 : f32
      %22 = vector.broadcast %cst_17 : f32 to vector<1x2x128xf32>
      %c0_18 = arith.constant 0 : index
      %c0_19 = arith.constant 0 : index
      %c0_20 = arith.constant 0 : index
      %23 = vector.load %arg6[%c0_18, %c0_19, %c0_20] : memref<1x2x128xf32, #tpu.memory_space<vmem>>, vector<1x2x128xf32>
      tpu.vector_store %arg6[%c0_18, %c0_19, %c0_20], %22 {strides = array<i32>} : memref<1x2x128xf32, #tpu.memory_space<vmem>>, vector<1x2x128xf32>,
    } else {
    }
    %c0 = arith.constant 0 : index
    %c0_1 = arith.constant 0 : index
    %3 = vector.load %arg2[%c0, %c0_1] : memref<16x1152xf32, #tpu.memory_space<vmem>>, vector<16x1152xf32>
    %c0_2 = arith.constant 0 : index
    %c0_3 = arith.constant 0 : index
    %4 = vector.load %arg3[%c0_2, %c0_3] : memref<1152x128xf32, #tpu.memory_space<vmem>>, vector<1152x128xf32>
    %cst = arith.constant dense<0.000000e+00> : vector<16x128xf32>
    %5 = tpu.matmul %3, %4, %cst {dimension_numbers = #tpu.dot_dimension_numbers<[1], [0], [0], [1], [0, 0, 1, 1], [], []>} : vector<16x1152xf32>, vector<1152x128xf32>, vector<16x128xf32> -> vector<16x128xf32>
    %c0_4 = arith.constant 0 : index
    %c0_5 = arith.constant 0 : index
    %6 = vector.load %arg4[%c0_4, %c0_5] : memref<1x128xf32, #tpu.memory_space<vmem>>, vector<1x128xf32>
    %7 = vector.broadcast %6 : vector<1x128xf32> to vector<16x128xf32>
    %8 = arith.addf %5, %7 : vector<16x128xf32>
    %cst_6 = arith.constant 0.000000e+00 : f32
    %9 = vector.broadcast %cst_6 : f32 to vector<16x128xf32>
    %10 = arith.maximumf %8, %9 : vector<16x128xf32>
    %c0_7 = arith.constant 0 : index
    %c0_8 = arith.constant 0 : index
    %11 = vector.load %arg5[%c0_7, %c0_8] : memref<16x128xf32, #tpu.memory_space<vmem>>, vector<16x128xf32>
    tpu.vector_store %arg5[%c0_7, %c0_8], %10 {strides = array<i32>} : memref<16x128xf32, #tpu.memory_space<vmem>>, vector<16x128xf32>,
    %cst_9 = arith.constant dense<0.000000e+00> : vector<128xf32>
    %12 = vector.multi_reduction <add>, %10, %cst_9 [0] : vector<16x128xf32> to vector<128xf32>
    %13 = vector.shape_cast %12 : vector<128xf32> to vector<1x128xf32>
    %14 = arith.mulf %10, %10 : vector<16x128xf32>
    %cst_10 = arith.constant dense<0.000000e+00> : vector<128xf32>
    %15 = vector.multi_reduction <add>, %14, %cst_10 [0] : vector<16x128xf32> to vector<128xf32>
    %16 = vector.shape_cast %15 : vector<128xf32> to vector<1x128xf32>
    %c0_11 = arith.constant 0 : index
    %c0_12 = arith.constant 0 : index
    %c0_13 = arith.constant 0 : index
    %17 = vector.load %arg6[%c0_11, %c0_12, %c0_13] : memref<1x2x128xf32, #tpu.memory_space<vmem>>, vector<1x2x128xf32>
    %18 = tpu.concatenate %13, %16 in 0 : vector<1x128xf32>, vector<1x128xf32> -> vector<2x128xf32>
    %19 = vector.shape_cast %18 : vector<2x128xf32> to vector<1x2x128xf32>
    %20 = arith.addf %17, %19 : vector<1x2x128xf32>
    %c0_14 = arith.constant 0 : index
    %c0_15 = arith.constant 0 : index
    %c0_16 = arith.constant 0 : index
    %21 = vector.load %arg6[%c0_14, %c0_15, %c0_16] : memref<1x2x128xf32, #tpu.memory_space<vmem>>, vector<1x2x128xf32>
    tpu.vector_store %arg6[%c0_14, %c0_15, %c0_16], %20 {strides = array<i32>} : memref<1x2x128xf32, #tpu.memory_space<vmem>>, vector<1x2x128xf32>,
    return
  }
  func.func @transform_0(%arg0: i32, %arg1: i32) -> (i32, i32) {
    %c1_i32 = arith.constant 1 : i32
    %0 = arith.muli %arg0, %c1_i32 : i32
    %1 = arith.addi %0, %arg1 : i32
    %c0_i32 = arith.constant 0 : i32
    %c0_i32_0 = arith.constant 0 : i32
    return %1, %c0_i32 : i32, i32
  }
  func.func @transform_1(%arg0: i32, %arg1: i32) -> (i32, i32) {
    %c0_i32 = arith.constant 0 : i32
    %c0_i32_0 = arith.constant 0 : i32
    %c0_i32_1 = arith.constant 0 : i32
    return %c0_i32, %c0_i32_0 : i32, i32
  }
  func.func @transform_2(%arg0: i32, %arg1: i32) -> (i32, i32) {
    %c0_i32 = arith.constant 0 : i32
    %c0_i32_0 = arith.constant 0 : i32
    %c0_i32_1 = arith.constant 0 : i32
    return %c0_i32, %c0_i32_0 : i32, i32
  }
  func.func @transform_3(%arg0: i32, %arg1: i32) -> (i32, i32) {
    %c1_i32 = arith.constant 1 : i32
    %0 = arith.muli %arg0, %c1_i32 : i32
    %1 = arith.addi %0, %arg1 : i32
    %c0_i32 = arith.constant 0 : i32
    %c0_i32_0 = arith.constant 0 : i32
    return %1, %c0_i32 : i32, i32
  }
  func.func @transform_4(%arg0: i32, %arg1: i32) -> (i32, i32, i32) {
    %c0_i32 = arith.constant 0 : i32
    %c0_i32_0 = arith.constant 0 : i32
    %c0_i32_1 = arith.constant 0 : i32
    return %arg0, %c0_i32, %c0_i32_0 : i32, i32, i32
  }
}

module attributes {stable_mosaic.version = 11 : i64} {
  func.func @_bn_apply_kernel(%arg0: i32, %arg1: memref<16x128xf32, #tpu.memory_space<vmem>>, %arg2: memref<1x128xf32, #tpu.memory_space<vmem>>, %arg3: memref<1x128xf32, #tpu.memory_space<vmem>>, %arg4: memref<16x128xf32, #tpu.memory_space<vmem>>) attributes {dimension_semantics = [#tpu.dimension_semantics<parallel>], iteration_bounds = array<i64: 2>, scalar_prefetch = 0 : i64, scratch_operands = 0 : i64, tpu.core_type = #tpu.core_type<tc>, window_params = [{transform_indices = @transform_0, window_bounds = array<i64: 16, 128>}, {pipeline_mode = #tpu.pipeline_mode<synchronous>, transform_indices = @transform_1, window_bounds = array<i64: 1, 128>}, {pipeline_mode = #tpu.pipeline_mode<synchronous>, transform_indices = @transform_2, window_bounds = array<i64: 1, 128>}, {transform_indices = @transform_3, window_bounds = array<i64: 16, 128>}]} {
    %c0 = arith.constant 0 : index
    %c0_0 = arith.constant 0 : index
    %0 = vector.load %arg1[%c0, %c0_0] : memref<16x128xf32, #tpu.memory_space<vmem>>, vector<16x128xf32>
    %c0_1 = arith.constant 0 : index
    %c0_2 = arith.constant 0 : index
    %1 = vector.load %arg2[%c0_1, %c0_2] : memref<1x128xf32, #tpu.memory_space<vmem>>, vector<1x128xf32>
    %2 = vector.broadcast %1 : vector<1x128xf32> to vector<16x128xf32>
    %3 = arith.mulf %0, %2 : vector<16x128xf32>
    %c0_3 = arith.constant 0 : index
    %c0_4 = arith.constant 0 : index
    %4 = vector.load %arg3[%c0_3, %c0_4] : memref<1x128xf32, #tpu.memory_space<vmem>>, vector<1x128xf32>
    %5 = vector.broadcast %4 : vector<1x128xf32> to vector<16x128xf32>
    %6 = arith.addf %3, %5 : vector<16x128xf32>
    %c0_5 = arith.constant 0 : index
    %c0_6 = arith.constant 0 : index
    %7 = vector.load %arg4[%c0_5, %c0_6] : memref<16x128xf32, #tpu.memory_space<vmem>>, vector<16x128xf32>
    tpu.vector_store %arg4[%c0_5, %c0_6], %6 {strides = array<i32>} : memref<16x128xf32, #tpu.memory_space<vmem>>, vector<16x128xf32>,
    return
  }
  func.func @transform_0(%arg0: i32) -> (i32, i32) {
    %c0_i32 = arith.constant 0 : i32
    %c0_i32_0 = arith.constant 0 : i32
    return %arg0, %c0_i32 : i32, i32
  }
  func.func @transform_1(%arg0: i32) -> (i32, i32) {
    %c0_i32 = arith.constant 0 : i32
    %c0_i32_0 = arith.constant 0 : i32
    %c0_i32_1 = arith.constant 0 : i32
    return %c0_i32, %c0_i32_0 : i32, i32
  }
  func.func @transform_2(%arg0: i32) -> (i32, i32) {
    %c0_i32 = arith.constant 0 : i32
    %c0_i32_0 = arith.constant 0 : i32
    %c0_i32_1 = arith.constant 0 : i32
    return %c0_i32, %c0_i32_0 : i32, i32
  }
  func.func @transform_3(%arg0: i32) -> (i32, i32) {
    %c0_i32 = arith.constant 0 : i32
    %c0_i32_0 = arith.constant 0 : i32
    return %arg0, %c0_i32 : i32, i32
  }
}

</mosaic_0001>

<bundles_post_ra>
// kernel: tile.23
= control target key start
LH: loop header
LB: loop body
LE: loop exit
PB: predicated region body
PF: predicated region fallthrough
CT: control target
= control target key end

     0   :  { %s28_s0 = inlined_call_operand.vmem [shape: f32[8], index: 0, kind: input, shape index: {}]   ;;  %s29_s1 = inlined_call_operand.vmem [shape: f32[16,8], index: 1, kind: output, shape index: {}]  }
   0x1   :  { %v4_v0 = vld [vmem:[%s28_s0] ss:$0 sm:$0xff] }
   0x2   :  { %5 = vst [vmem:[%s29_s1] sm:$0xff] %v4_v0 }
   0x3   :  { %8 = vst [vmem:[%s29_s1 + $0x8] sm:$0xff] %v4_v0 }

// kernel: tile.24
= control target key start
LH: loop header
LB: loop body
LE: loop exit
PB: predicated region body
PF: predicated region fallthrough
CT: control target
= control target key end

     0   :  { %s131_s10 = smov 120   ;;  %s132_s11 = smov 104   ;;  %vm3_vm0 = vcmask 64512   ;;  %vm9_vm1 = vcmask 1048512   ;;  %vm15_vm2 = vcmask 982912   ;;  %vm21_vm3 = vcmask 917312   ;;  %s207_s0 = inlined_call_operand.vmem [shape: f32[16,8], index: 0, kind: input, shape index: {}]   ;;  %s208_s1 = inlined_call_operand.vmem [shape: f32[1,128], index: 1, kind: output, shape index: {}]  }
   0x1   :  { %v101_v0 = vld [vmem:[%s207_s0 + $0xf] sm:$0x1]   ;;  %v103_v1 = vld [vmem:[%s207_s0 + $0xd] sm:$0x1]   ;;  %v105_v2 = vld [vmem:[%s207_s0 + $0xb] sm:$0x1]  }
   0x2   :  { %7 = vrot.lane.b32.xlu0 %v101_v0, %s131_s10  ;;  %19 = vrot.lane.b32.xlu1 %v103_v1, %s132_s11  ;;  %s133_s14 = smov 88   ;;  %v102_v3 = vld [vmem:[%s207_s0 + $0xe] sm:$0x1]   ;;  %v104_v4 = vld [vmem:[%s207_s0 + $0xc] sm:$0x1]   ;;  %s134_s19 = smov 112  }
   0x3   :  { %31 = vrot.lane.b32.xlu2 %v105_v2, %s133_s14  ;;  %s135_s20 = smov 96   ;;  %v106_v5 = vld [vmem:[%s207_s0 + $0xa] sm:$0x1]   ;;  %s136_s23 = smov 80   ;;  %v107_v6 = vld [vmem:[%s207_s0 + $0x9] sm:$0x1]  }
   0x4   :  { %v108_v7 = vld [vmem:[%s207_s0 + $0x8] sm:$0x1]   ;;  %s137_s28 = smov 72   ;;  %s138_s29 = smov 64   ;;  %v109_v8 = vld [vmem:[%s207_s0 + $0x7] sm:$0x1]  }
   0x5   :  { %s139_s3 = smov 56   ;;  %v110_v9 = vld [vmem:[%s207_s0 + $0x6] sm:$0x1]   ;;  %v111_v10 = vld [vmem:[%s207_s0 + $0x5] sm:$0x1]   ;;  %s140_s8 = smov 48  }
   0x6   :  { %s141_s9 = smov 40   ;;  %v112_v11 = vld [vmem:[%s207_s0 + $0x4] sm:$0x1]   ;;  %s142_s12 = smov 32   ;;  %v113_v12 = vld [vmem:[%s207_s0 + $0x3] sm:$0x1]  }
   0x7   :  { %v114_v13 = vld [vmem:[%s207_s0 + $0x2] sm:$0x1]   ;;  %s143_s17 = smov 24   ;;  %s144_s18 = smov 16   ;;  %v115_v14 = vld [vmem:[%s207_s0 + $0x1] sm:$0x1]  }
   0x8   :  { %s145_s21 = smov 8   ;;  %v2_v15 = vld [vmem:[%s207_s0] sm:$0x1]   ;;  %vm27_vm4 = vcmask 851712   ;;  %vm33_vm5 = vcmask 786112   ;;  %vm39_vm6 = vcmask 720512  }
   0x9   :  { %4 = vst.msk [vmem:[#allocation0] sm:$0x1] %vm3_vm0, %v2_v15   ;;  %vm45_vm7 = vcmask 654912   ;;  %vm51_vm8 = vcmask 589312   ;;  %vm57_vm9 = vcmask 523712   ;;  %vm63_vm10 = vcmask 458112  }
   0xa   :  { %13 = vrot.lane.b32.xlu0 %v102_v3, %s134_s19  ;;  %25 = vrot.lane.b32.xlu1 %v104_v4, %s135_s20  ;;  %vm69_vm11 = vcmask 392512   ;;  %vm75_vm12 = vcmask 326912   ;;  %vm81_vm13 = vcmask 261312   ;;  %vm87_vm14 = vcmask 195712  }
   0xb   :  { %37 = vrot.lane.b32.xlu2 %v106_v5, %s136_s23  ;;  %vm93_vm15 = vcmask 130112  }
  0x12   :  { %43 = vrot.lane.b32.xlu0 %v107_v6, %s137_s28  ;;  %49 = vrot.lane.b32.xlu1 %v108_v7, %s138_s29 }
  0x13   :  { %55 = vrot.lane.b32.xlu2 %v109_v8, %s139_s3 }
  0x1a   :  { %61 = vrot.lane.b32.xlu0 %v110_v9, %s140_s8  ;;  %67 = vrot.lane.b32.xlu1 %v111_v10, %s141_s9 }
  0x1b   :  { %73 = vrot.lane.b32.xlu2 %v112_v11, %s142_s12 }
  0x22   :  { %79 = vrot.lane.b32.xlu0 %v113_v12, %s143_s17  ;;  %85 = vrot.lane.b32.xlu1 %v114_v13, %s144_s18 }
  0x23   :  { %91 = vrot.lane.b32.xlu2 %v115_v14, %s145_s21 }
  0x5d   :  { %v32_v16 = vpop.permute.xlu2 %31  }
  0x65   :  { %v38_v17 = vpop.permute.xlu2 %37  }
  0x6d   :  { %v56_v18 = vpop.permute.xlu2 %55  }
  0x74   :  { %v8_v19 = vpop.permute.xlu0 %7   ;;  %v20_v20 = vpop.permute.xlu1 %19  }
  0x75   :  { %10 = vst.msk [vmem:[#allocation0] sm:$0x1] %vm9_vm1, %v8_v19   ;;  %v74_v21 = vpop.permute.xlu2 %73  }
  0x7c   :  { %v14_v22 = vpop.permute.xlu0 %13   ;;  %v26_v23 = vpop.permute.xlu1 %25  }
  0x7d   :  { %16 = vst.msk [vmem:[#allocation0] sm:$0x1] %vm15_vm2, %v14_v22   ;;  %v92_v24 = vpop.permute.xlu2 %91  }
  0x7e   :  { %22 = vst.msk [vmem:[#allocation0] sm:$0x1] %vm21_vm3, %v20_v20  }
  0x7f   :  { %28 = vst.msk [vmem:[#allocation0] sm:$0x1] %vm27_vm4, %v26_v23  }
  0x80   :  { %34 = vst.msk [vmem:[#allocation0] sm:$0x1] %vm33_vm5, %v32_v16  }
  0x81   :  { %40 = vst.msk [vmem:[#allocation0] sm:$0x1] %vm39_vm6, %v38_v17  }
  0x84   :  { %v44_v25 = vpop.permute.xlu0 %43   ;;  %v50_v26 = vpop.permute.xlu1 %49  }
  0x85   :  { %46 = vst.msk [vmem:[#allocation0] sm:$0x1] %vm45_vm7, %v44_v25  }
  0x86   :  { %52 = vst.msk [vmem:[#allocation0] sm:$0x1] %vm51_vm8, %v50_v26  }
  0x87   :  { %58 = vst.msk [vmem:[#allocation0] sm:$0x1] %vm57_vm9, %v56_v18  }
  0x8c   :  { %v62_v27 = vpop.permute.xlu0 %61   ;;  %v68_v28 = vpop.permute.xlu1 %67  }
  0x8d   :  { %64 = vst.msk [vmem:[#allocation0] sm:$0x1] %vm63_vm10, %v62_v27  }
  0x8e   :  { %70 = vst.msk [vmem:[#allocation0] sm:$0x1] %vm69_vm11, %v68_v28  }
  0x8f   :  { %76 = vst.msk [vmem:[#allocation0] sm:$0x1] %vm75_vm12, %v74_v21  }
  0x94   :  { %v80_v29 = vpop.permute.xlu0 %79   ;;  %v86_v30 = vpop.permute.xlu1 %85  }
  0x95   :  { %82 = vst.msk [vmem:[#allocation0] sm:$0x1] %vm81_vm13, %v80_v29  }
  0x96   :  { %88 = vst.msk [vmem:[#allocation0] sm:$0x1] %vm87_vm14, %v86_v30  }
  0x97   :  { %94 = vst.msk [vmem:[#allocation0] sm:$0x1] %vm93_vm15, %v92_v24  }
  0x9e   :  { %v97_v31 = vld [vmem:[#allocation0] sm:$0x1] }
  0x9f   :  { %100 = vst [vmem:[%s208_s1] sm:$0x1] %v97_v31 }

// kernel: conv_block_forward.3
= control target key start
LH: loop header
LB: loop body
LE: loop exit
PB: predicated region body
PF: predicated region fallthrough
CT: control target
= control target key end

     0   :  { %s511_s12 = smov 0   ;;  %s795_s0 = inlined_call_operand.vmem [shape: f32[32,640], index: 0, kind: input, shape index: {}]   ;;  %s796_s1 = inlined_call_operand.vmem [shape: f32[640,128], index: 1, kind: input, shape index: {}]   ;;  %s797_s2 = inlined_call_operand.vmem [shape: f32[1,128], index: 2, kind: input, shape index: {}]   ;;  %s798_s3 = inlined_call_operand.vmem [shape: f32[32,128], index: 3, kind: output, shape index: {}]  }
   0x1 LB: > { %s446_s13 = sadd.s32 4294967295, %s489_s12   ;;  %p450_p0 = scmp.ge.s32.totalorder %s489_s12, 1  ;;  %s489_s12 = sphi %s511_s12, %s13_s12  }
   0x2   : > { %p139_p1 = scmp.lt.s32.totalorder %s489_s12, 3 }
   0x4   : > { %p140_p2 = pnand %p450_p0, %p139_p1 }
   0x5   : > { %s632_s11 = sshll.u32 (!%p140_p2), %s446_s13, 1 }
   0x6   : > { %143 = sbr.rel (%p140_p2) target bundleno = 207 (0xcf), region = 32  ;;  %p165_p3 = scmp.lt.s32.totalorder (!%p140_p2), %s632_s11, 3 }
   0xb   : > { %v202_v0 = vld [vmem:[%s796_s1 + $0x78] sm:$0xff]  ;;  %v201_v2 = vld [vmem:[%s796_s1 + $0x70] sm:$0xff]  ;;  %v200_v4 = vld [vmem:[%s796_s1 + $0x68] sm:$0xff]  ;;  %s800_s11 = smov (!%p165_p3, %s632_s11), 3 }
   0xc   : > { %v218_v1 = vld [vmem:[%s796_s1 + $0xf8] sm:$0xff]  ;;  %271 = vmatpush.msra.mxu0 %v202_v0  ;;  %v217_v3 = vld [vmem:[%s796_s1 + $0xf0] sm:$0xff]  ;;  %v216_v5 = vld [vmem:[%s796_s1 + $0xe8] sm:$0xff]  ;;  %s473_s30 = smul.u32 40, %s800_s11 }
   0xd   : > { %294 = vmatpush.msra.mxu1 %v218_v1  ;;  %v199_v6 = vld [vmem:[%s796_s1 + $0x60] sm:$0xff]  ;;  %v234_v8 = vld [vmem:[%s796_s1 + $0x178] sm:$0xff]  ;;  %v233_v9 = vld [vmem:[%s796_s1 + $0x170] sm:$0xff] }
   0xe   : > { %272 = vmatpush.msra.mxu0 %v201_v2  ;;  %v215_v7 = vld [vmem:[%s796_s1 + $0xe0] sm:$0xff]  ;;  %v198_v10 = vld [vmem:[%s796_s1 + $0x58] sm:$0xff]  ;;  %317 = vmatpush.msra.mxu2 %v234_v8  ;;  %v232_v13 = vld [vmem:[%s796_s1 + $0x168] sm:$0xff]  ;;  %s725_s21 = scalar_lea.vmem %s795_s0, %s473_s30 }
   0xf   : > { %295 = vmatpush.msra.mxu1 %v217_v3  ;;  %v214_v11 = vld [vmem:[%s796_s1 + $0xd8] sm:$0xff]  ;;  %v249_v14 = vld [vmem:[%s796_s1 + $0x1f0] sm:$0xff]  ;;  %v231_v17 = vld [vmem:[%s796_s1 + $0x160] sm:$0xff] }
  0x10   : > { %273 = vmatpush.msra.mxu0 %v200_v4  ;;  %v250_v12 = vld [vmem:[%s796_s1 + $0x1f8] sm:$0xff]  ;;  %v197_v15 = vld [vmem:[%s796_s1 + $0x50] sm:$0xff]  ;;  %318 = vmatpush.msra.mxu2 %v233_v9  ;;  %v248_v18 = vld [vmem:[%s796_s1 + $0x1e8] sm:$0xff] }
  0x11   : > { %296 = vmatpush.msra.mxu1 %v216_v5  ;;  %v213_v16 = vld [vmem:[%s796_s1 + $0xd0] sm:$0xff]  ;;  %340 = vmatpush.msra.mxu3 %v250_v12  ;;  %v196_v19 = vld [vmem:[%s796_s1 + $0x48] sm:$0xff]  ;;  %v230_v21 = vld [vmem:[%s796_s1 + $0x158] sm:$0xff] }
  0x12   : > { %274 = vmatpush.msra.mxu0 %v199_v6  ;;  %v212_v20 = vld [vmem:[%s796_s1 + $0xc8] sm:$0xff]  ;;  %319 = vmatpush.msra.mxu2 %v232_v13  ;;  %v247_v22 = vld [vmem:[%s796_s1 + $0x1e0] sm:$0xff]  ;;  %v229_v25 = vld [vmem:[%s796_s1 + $0x150] sm:$0xff] }
  0x13   : > { %297 = vmatpush.msra.mxu1 %v215_v7  ;;  %341 = vmatpush.msra.mxu3 %v249_v14  ;;  %v195_v23 = vld [vmem:[%s796_s1 + $0x40] sm:$0xff]  ;;  %v246_v26 = vld [vmem:[%s796_s1 + $0x1d8] sm:$0xff]  ;;  %v228_v29 = vld [vmem:[%s796_s1 + $0x148] sm:$0xff] }
  0x14   : > { %275 = vmatpush.msra.mxu0 %v198_v10  ;;  %v211_v24 = vld [vmem:[%s796_s1 + $0xc0] sm:$0xff]  ;;  %320 = vmatpush.msra.mxu2 %v231_v17  ;;  %v194_v27 = vld [vmem:[%s796_s1 + $0x38] sm:$0xff]  ;;  %v245_v30 = vld [vmem:[%s796_s1 + $0x1d0] sm:$0xff] }
  0x15   : > { %298 = vmatpush.msra.mxu1 %v214_v11  ;;  %342 = vmatpush.msra.mxu3 %v248_v18  ;;  %v210_v28 = vld [vmem:[%s796_s1 + $0xb8] sm:$0xff]  ;;  %v193_v31 = vld [vmem:[%s796_s1 + $0x30] sm:$0xff]  ;;  %v227_v33 = vld [vmem:[%s796_s1 + $0x140] sm:$0xff] }
  0x16   : > { %276 = vmatpush.msra.mxu0 %v197_v15  ;;  %321 = vmatpush.msra.mxu2 %v230_v21  ;;  %v209_v32 = vld [vmem:[%s796_s1 + $0xb0] sm:$0xff]  ;;  %v244_v34 = vld [vmem:[%s796_s1 + $0x1c8] sm:$0xff]  ;;  %v226_v37 = vld [vmem:[%s796_s1 + $0x138] sm:$0xff] }
  0x17   : > { %299 = vmatpush.msra.mxu1 %v213_v16  ;;  %343 = vmatpush.msra.mxu3 %v247_v22  ;;  %v192_v35 = vld [vmem:[%s796_s1 + $0x28] sm:$0xff]  ;;  %v243_v38 = vld [vmem:[%s796_s1 + $0x1c0] sm:$0xff]  ;;  %v225_v41 = vld [vmem:[%s796_s1 + $0x130] sm:$0xff] }
  0x18   : > { %277 = vmatpush.msra.mxu0 %v196_v19  ;;  %322 = vmatpush.msra.mxu2 %v229_v25  ;;  %v208_v36 = vld [vmem:[%s796_s1 + $0xa8] sm:$0xff]  ;;  %v191_v39 = vld [vmem:[%s796_s1 + $0x20] sm:$0xff]  ;;  %v242_v42 = vld [vmem:[%s796_s1 + $0x1b8] sm:$0xff] }
  0x19   : > { %300 = vmatpush.msra.mxu1 %v212_v20  ;;  %344 = vmatpush.msra.mxu3 %v246_v26  ;;  %v207_v40 = vld [vmem:[%s796_s1 + $0xa0] sm:$0xff]  ;;  %v190_v43 = vld [vmem:[%s796_s1 + $0x18] sm:$0xff]  ;;  %v224_v45 = vld [vmem:[%s796_s1 + $0x128] sm:$0xff] }
  0x1a   : > { %278 = vmatpush.msra.mxu0 %v195_v23  ;;  %323 = vmatpush.msra.mxu2 %v228_v29  ;;  %v206_v44 = vld [vmem:[%s796_s1 + $0x98] sm:$0xff]  ;;  %v241_v46 = vld [vmem:[%s796_s1 + $0x1b0] sm:$0xff]  ;;  %v223_v49 = vld [vmem:[%s796_s1 + $0x120] sm:$0xff] }
  0x1b   : > { %301 = vmatpush.msra.mxu1 %v211_v24  ;;  %345 = vmatpush.msra.mxu3 %v245_v30  ;;  %v189_v47 = vld [vmem:[%s796_s1 + $0x10] sm:$0xff]  ;;  %v240_v50 = vld [vmem:[%s796_s1 + $0x1a8] sm:$0xff]  ;;  %v222_v53 = vld [vmem:[%s796_s1 + $0x118] sm:$0xff] }
  0x1c   : > { %279 = vmatpush.msra.mxu0 %v194_v27  ;;  %324 = vmatpush.msra.mxu2 %v227_v33  ;;  %v205_v48 = vld [vmem:[%s796_s1 + $0x90] sm:$0xff]  ;;  %v188_v51 = vld [vmem:[%s796_s1 + $0x8] sm:$0xff]  ;;  %v239_v54 = vld [vmem:[%s796_s1 + $0x1a0] sm:$0xff] }
  0x1d   : > { %302 = vmatpush.msra.mxu1 %v210_v28  ;;  %346 = vmatpush.msra.mxu3 %v244_v34  ;;  %v204_v52 = vld [vmem:[%s796_s1 + $0x88] sm:$0xff]  ;;  %v187_v55 = vld [vmem:[%s796_s1] sm:$0xff]  ;;  %v266_v57 = vld [vmem:[%s796_s1 + $0x278] sm:$0xff] }
  0x1e   : > { %280 = vmatpush.msra.mxu0 %v193_v31  ;;  %325 = vmatpush.msra.mxu2 %v226_v37  ;;  %v203_v56 = vld [vmem:[%s796_s1 + $0x80] sm:$0xff]  ;;  %v221_v58 = vld [vmem:[%s796_s1 + $0x110] sm:$0xff]  ;;  %v238_v59 = vld [vmem:[%s796_s1 + $0x198] sm:$0xff] }
  0x1f   : > { %303 = vmatpush.msra.mxu1 %v209_v32  ;;  %347 = vmatpush.msra.mxu3 %v243_v38  ;;  %v265_v60 = vld [vmem:[%s796_s1 + $0x270] sm:$0xff]  ;;  %v220_v61 = vld [vmem:[%s796_s1 + $0x108] sm:$0xff]  ;;  %v219_v0 = vld [vmem:[%s796_s1 + $0x100] sm:$0xff] }
  0x20   : > { %281 = vmatpush.msra.mxu0 %v192_v35  ;;  %326 = vmatpush.msra.mxu2 %v225_v41  ;;  %v237_v62 = vld [vmem:[%s796_s1 + $0x190] sm:$0xff]  ;;  %v264_v63 = vld [vmem:[%s796_s1 + $0x268] sm:$0xff]  ;;  %v263_v2 = vld [vmem:[%s796_s1 + $0x260] sm:$0xff] }
  0x21   : > { %304 = vmatpush.msra.mxu1 %v208_v36  ;;  %348 = vmatpush.msra.mxu3 %v242_v42  ;;  %v236_v1 = vld [vmem:[%s796_s1 + $0x188] sm:$0xff]  ;;  %v179_v3 = vld [vmem:[%s725_s21 + $0x10] sm:$0xff]  ;;  %v235_v4 = vld [vmem:[%s796_s1 + $0x180] sm:$0xff] }
  0x22   : > { %282 = vmatpush.msra.mxu0 %v191_v39  ;;  %327 = vmatpush.msra.mxu2 %v224_v45  ;;  %v262_v5 = vld [vmem:[%s796_s1 + $0x258] sm:$0xff]  ;;  %v177_v6 = vld [vmem:[%s725_s21] sm:$0xff]  ;;  %v261_v8 = vld [vmem:[%s796_s1 + $0x250] sm:$0xff] }
  0x23   : > { %305 = vmatpush.msra.mxu1 %v207_v40  ;;  %349 = vmatpush.msra.mxu3 %v241_v46  ;;  %v180_v7 = vld [vmem:[%s725_s21 + $0x18] sm:$0xff]  ;;  %v178_v9 = vld [vmem:[%s725_s21 + $0x8] sm:$0xff]  ;;  %v259_v11 = vld [vmem:[%s796_s1 + $0x240] sm:$0xff] }
  0x24   : > { %283 = vmatpush.msra.mxu0 %v190_v43  ;;  %328 = vmatpush.msra.mxu2 %v223_v49  ;;  %v260_v10 = vld [vmem:[%s796_s1 + $0x248] sm:$0xff]  ;;  %v184_v12 = vld [vmem:[%s725_s21 + $0x38] sm:$0xff]  ;;  %v185_v15 = vld [vmem:[%s725_s21 + $0x40] sm:$0xff] }
  0x25   : > { %306 = vmatpush.msra.mxu1 %v206_v44  ;;  %350 = vmatpush.msra.mxu3 %v240_v50  ;;  %v258_v13 = vld [vmem:[%s796_s1 + $0x238] sm:$0xff]  ;;  %v182_v14 = vld [vmem:[%s725_s21 + $0x28] sm:$0xff]  ;;  %v257_v16 = vld [vmem:[%s796_s1 + $0x230] sm:$0xff] }
  0x26   : > { %284 = vmatpush.msra.mxu0 %v189_v47  ;;  %329 = vmatpush.msra.mxu2 %v222_v53  ;;  %v183_v17 = vld [vmem:[%s725_s21 + $0x30] sm:$0xff]  ;;  %v256_v18 = vld [vmem:[%s796_s1 + $0x228] sm:$0xff]  ;;  %v255_v19 = vld [vmem:[%s796_s1 + $0x220] sm:$0xff] }
  0x27   : > { %307 = vmatpush.msra.mxu1 %v205_v48  ;;  %351 = vmatpush.msra.mxu3 %v239_v54  ;;  %v254_v20 = vld [vmem:[%s796_s1 + $0x218] sm:$0xff]  ;;  %v253_v21 = vld [vmem:[%s796_s1 + $0x210] sm:$0xff]  ;;  %v252_v22 = vld [vmem:[%s796_s1 + $0x208] sm:$0xff] }
  0x28   : > { %285 = vmatpush.msra.mxu0 %v188_v51  ;;  %330 = vmatpush.msra.mxu2 %v221_v58  ;;  %v251_v23 = vld [vmem:[%s796_s1 + $0x200] sm:$0xff]  ;;  %v186_v25 = vld [vmem:[%s725_s21 + $0x48] sm:$0xff] }
  0x29   : > { %308 = vmatpush.msra.mxu1 %v204_v52  ;;  %352 = vmatpush.msra.mxu3 %v238_v59  ;;  %v181_v24 = vld [vmem:[%s725_s21 + $0x20] sm:$0xff]  ;;  %s454_s21 = sshll.u32 %s800_s11, 3 }
  0x2a   : > { %286 = vmatpush.msra.mxu0 %v187_v55  ;;  %331 = vmatpush.msra.mxu2 %v220_v61  ;;  %v482_v29 = vld [vmem:[%s797_s2] ss:$0 sm:$0xff]  ;;  %s175_s6 = scalar_lea.vmem %s798_s3, %s454_s21 }
  0x2b   : > { %309 = vmatpush.msra.mxu1 %v203_v56  ;;  %353 = vmatpush.msra.mxu3 %v237_v62 }
  0x2c   : > { %363 = vmatpush.msrb.mxu0 %v266_v57  ;;  %332 = vmatpush.msra.mxu2 %v219_v0 }
  0x2d   : > { %457 = vmatpush.msrb.mxu1 %v266_v57  ;;  %354 = vmatpush.msra.mxu3 %v236_v1 }
  0x2e   : > { %364 = vmatpush.msrb.mxu0 %v265_v60  ;;  %333 = vmatmul.f32.vlgmr.msra.gmra.mxu2 %v179_v3 }
  0x2f   : > { %458 = vmatpush.msrb.mxu1 %v265_v60  ;;  %355 = vmatpush.msra.mxu3 %v235_v4 }
  0x30   : > { %365 = vmatpush.msrb.mxu0 %v264_v63  ;;  %356 = vmatmul.f32.vlgmr.msra.gmra.mxu3 %v180_v7 }
  0x31   : > { %459 = vmatpush.msrb.mxu1 %v264_v63  ;;  %287 = vmatmul.f32.vlgmr.msra.gmra.mxu0 %v177_v6 }
  0x32   : > { %366 = vmatpush.msrb.mxu0 %v263_v2  ;;  %310 = vmatmul.f32.vlgmr.msra.gmra.mxu1 %v178_v9 }
  0x33   : > { %460 = vmatpush.msrb.mxu1 %v263_v2 }
  0x34   : > { %367 = vmatpush.msrb.mxu0 %v262_v5 }
  0x35   : > { %461 = vmatpush.msrb.mxu1 %v262_v5 }
  0x36   : > { %368 = vmatpush.msrb.mxu0 %v261_v8  ;;  %336 = vmatmul.f32.gmra.mxu2 %v184_v12 }
  0x37   : > { %462 = vmatpush.msrb.mxu1 %v261_v8 }
  0x38   : > { %369 = vmatpush.msrb.mxu0 %v260_v10  ;;  %359 = vmatmul.f32.gmra.mxu3 %v185_v15 }
  0x39   : > { %463 = vmatpush.msrb.mxu1 %v260_v10  ;;  %290 = vmatmul.f32.gmra.mxu0 %v182_v14 }
  0x3a   : > { %370 = vmatpush.msrb.mxu0 %v259_v11  ;;  %313 = vmatmul.f32.gmra.mxu1 %v183_v17 }
  0x3b   : > { %464 = vmatpush.msrb.mxu1 %v259_v11 }
  0x3c   : > { %371 = vmatpush.msrb.mxu0 %v258_v13 }
  0x3d   : > { %465 = vmatpush.msrb.mxu1 %v258_v13 }
  0x3e   : > { %372 = vmatpush.msrb.mxu0 %v257_v16 }
  0x3f   : > { %466 = vmatpush.msrb.mxu1 %v257_v16 }
  0x40   : > { %373 = vmatpush.msrb.mxu0 %v256_v18 }
  0x41   : > { %467 = vmatpush.msrb.mxu1 %v256_v18 }
  0x42   : > { %374 = vmatpush.msrb.mxu0 %v255_v19 }
  0x43   : > { %468 = vmatpush.msrb.mxu1 %v255_v19 }
  0x44   : > { %375 = vmatpush.msrb.mxu0 %v254_v20 }
  0x45   : > { %469 = vmatpush.msrb.mxu1 %v254_v20 }
  0x46   : > { %376 = vmatpush.msrb.mxu0 %v253_v21 }
  0x47   : > { %470 = vmatpush.msrb.mxu1 %v253_v21 }
  0x48   : > { %377 = vmatpush.msrb.mxu0 %v252_v22 }
  0x49   : > { %471 = vmatpush.msrb.mxu1 %v252_v22 }
  0x4a   : > { %378 = vmatpush.msrb.mxu0 %v251_v23 }
  0x4b   : > { %472 = vmatpush.msrb.mxu1 %v251_v23  ;;  %379 = vmatmul.f32.vlgmr.msrb.gmra.mxu0 %v181_v24 }
  0x4c   : > { %382 = vmatmul.f32.vlgmr.msrb.gmra.mxu1 %v186_v25 }
  0xae   : > { %v288_v26 = vpop.f32.mrf.mxu0 }
  0xaf   : > { %v311_v27 = vpop.f32.mrf.mxu1  ;;  %v289_v32 = vadd.f32 %v482_v29, %v288_v26 }
  0xb1   : > { %v334_v28 = vpop.f32.mrf.mxu2  ;;  %v312_v37 = vadd.f32 %v311_v27, %v289_v32 }
  0xb3   : > { %v357_v30 = vpop.f32.mrf.mxu3  ;;  %v335_v40 = vadd.f32 %v334_v28, %v312_v37 }
  0xb5   : > { %v358_v42 = vadd.f32 %v357_v30, %v335_v40 }
  0xb6   : > { %v291_v31 = vpop.f32.mrf.mxu0 }
  0xb7   : > { %v292_v33 = vadd.f32 %v482_v29, %v291_v31  ;;  %v314_v34 = vpop.f32.mrf.mxu1 }
  0xb9   : > { %v315_v35 = vadd.f32 %v314_v34, %v292_v33  ;;  %v337_v36 = vpop.f32.mrf.mxu2 }
  0xbb   : > { %v338_v38 = vadd.f32 %v337_v36, %v315_v35  ;;  %v360_v39 = vpop.f32.mrf.mxu3 }
  0xbd   : > { %v361_v41 = vadd.f32 %v360_v39, %v338_v38 }
  0xc8   : > { %v380_v43 = vpop.f32.mrf.mxu0 }
  0xc9   : > { %v383_v44 = vpop.f32.mrf.mxu1  ;;  %v381_v45 = vadd.f32 %v380_v43, %v358_v42 }
  0xca   : > { %v384_v46 = vadd.f32 %v383_v44, %v361_v41 }
  0xcb   : > { %v386_v47 = vmax.f32 %v381_v45, 0.0 }
  0xcc   : > { %v387_v48 = vmax.f32 %v384_v46, 0.0 }
  0xcd   : > { %388 = vst [vmem:[%s175_s6] sm:$0xff] %v386_v47 }
  0xce   : > { %389 = vst [vmem:[%s175_s6 + $0x8] sm:$0xff] %v387_v48 }
  0xcf PF: > { %s13_s12 = sadd.s32 1, %s489_s12  }
  0xd0   : > { %p10_p4 = scmp.ge.s32.totalorder %s13_s12, 4  }
  0xd2   :  { %12 = sbr.rel (!%p10_p4) target bundleno = 1 (0x1), region = 62 }

// kernel: mul.18
= control target key start
LH: loop header
LB: loop body
LE: loop exit
PB: predicated region body
PF: predicated region fallthrough
CT: control target
= control target key end

     0   :  { %vm100_vm0 = vcmask 1047556   ;;  %s215_s13 = smov 64   ;;  %s216_s14 = smov 48   ;;  %vm102_vm1 = vcmask 64512   ;;  %vm112_vm2 = vcmask 589312   ;;  %vm122_vm3 = vcmask 523712   ;;  %s341_s0 = inlined_call_operand.vmem [shape: f32[3,3,8,8], index: 0, kind: input, shape index: {}]   ;;  %s342_s1 = inlined_call_operand.vmem [shape: f32[72,8], index: 1, kind: output, shape index: {}]  }
   0x1   :  { %v184_v0 = vld [vmem:[%s341_s0 + $0x5c] sm:$0xf]  ;;  %v187_v1 = vld [vmem:[%s341_s0 + $0x50] sm:$0xf]  ;;  %v190_v2 = vld [vmem:[%s341_s0 + $0x44] sm:$0xf] }
   0x2   :  { %7 = vst [vmem:[#allocation0 + $0xb8] sm:$0xf] %v184_v0  ;;  %v193_v3 = vld [vmem:[%s341_s0 + $0x38] sm:$0xf]  ;;  %v196_v4 = vld [vmem:[%s341_s0 + $0x2c] sm:$0xf] }
   0x3   :  { %19 = vst [vmem:[#allocation0 + $0xa0] sm:$0xf] %v187_v1  ;;  %v199_v5 = vld [vmem:[%s341_s0 + $0x20] sm:$0xf]  ;;  %v202_v6 = vld [vmem:[%s341_s0 + $0x14] sm:$0xf] }
   0x4   :  { %31 = vst [vmem:[#allocation0 + $0x88] sm:$0xf] %v190_v2  ;;  %v205_v7 = vld [vmem:[%s341_s0 + $0x8] sm:$0xf]  ;;  %v185_v8 = vld [vmem:[%s341_s0 + $0x58] sm:$0xf] }
   0x5   :  { %43 = vst [vmem:[#allocation0 + $0x70] sm:$0xf] %v193_v3  ;;  %v188_v9 = vld [vmem:[%s341_s0 + $0x4c] sm:$0xf]  ;;  %v191_v10 = vld [vmem:[%s341_s0 + $0x40] sm:$0xf] }
   0x6   :  { %55 = vst [vmem:[#allocation0 + $0x58] sm:$0xf] %v196_v4  ;;  %v194_v11 = vld [vmem:[%s341_s0 + $0x34] sm:$0xf]  ;;  %v197_v12 = vld [vmem:[%s341_s0 + $0x28] sm:$0xf] }
   0x7   :  { %67 = vst [vmem:[#allocation0 + $0x40] sm:$0xf] %v199_v5  ;;  %v200_v13 = vld [vmem:[%s341_s0 + $0x1c] sm:$0xf]  ;;  %v203_v16 = vld [vmem:[%s341_s0 + $0x10] sm:$0xf] }
   0x8   :  { %79 = vst [vmem:[#allocation0 + $0x28] sm:$0xf] %v202_v6  ;;  %v206_v17 = vld [vmem:[%s341_s0 + $0x4] sm:$0xf]  ;;  %v186_v22 = vld [vmem:[%s341_s0 + $0x54] sm:$0xf] }
   0x9   :  { %91 = vst [vmem:[#allocation0 + $0x10] sm:$0xf] %v205_v7  ;;  %v189_v23 = vld [vmem:[%s341_s0 + $0x48] sm:$0xf]  ;;  %v192_v24 = vld [vmem:[%s341_s0 + $0x3c] sm:$0xf] }
   0xa   :  { %11 = vst [vmem:[#allocation0 + $0xb0] sm:$0xf] %v185_v8  ;;  %v195_v25 = vld [vmem:[%s341_s0 + $0x30] sm:$0xf]  ;;  %v198_v28 = vld [vmem:[%s341_s0 + $0x24] sm:$0xf] }
   0xb   :  { %23 = vst [vmem:[#allocation0 + $0x98] sm:$0xf] %v188_v9  ;;  %v201_v29 = vld [vmem:[%s341_s0 + $0x18] sm:$0xf]  ;;  %v204_v31 = vld [vmem:[%s341_s0 + $0xc] sm:$0xf] }
   0xc   :  { %v107_v14 = vld [vmem:[#allocation0 + $0x12] ss:$24 sm:$0xf0]   ;;  %35 = vst [vmem:[#allocation0 + $0x80] sm:$0xf] %v191_v10  ;;  %s218_s27 = smov 40  }
   0xd   :  { %v127_v15 = vld [vmem:[#allocation0 + $0x10] ss:$24 sm:$0xf0]   ;;  %47 = vst [vmem:[#allocation0 + $0x68] sm:$0xf] %v194_v11  ;;  %s219_s28 = smov 32  }
   0xe   :  { %59 = vst [vmem:[#allocation0 + $0x50] sm:$0xf] %v197_v12  ;;  %v117_v26 = vld [vmem:[#allocation0 + $0x11] ss:$24 sm:$0xf0]   ;;  %s220_s29 = smov 16  }
   0xf   :  { %71 = vst [vmem:[#allocation0 + $0x38] sm:$0xf] %v200_v13  ;;  %v96_v32 = vld [vmem:[%s341_s0] sm:$0xf]  ;;  %s217_s0 = smov 56   ;;  %s221_s30 = smov 8  }
  0x10   :  { %v105_v18 = vld [vmem:[#allocation0 + $0x12] ss:$24 sm:$0xf]   ;;  %v125_v19 = vld [vmem:[#allocation0 + $0x10] ss:$24 sm:$0xf]  }
  0x11   :  { %v109_v20 = vsel %vm100_vm0, %v107_v14, %v105_v18  ;;  %v129_v21 = vsel %vm100_vm0, %v127_v15, %v125_v19  ;;  %83 = vst [vmem:[#allocation0 + $0x20] sm:$0xf] %v203_v16  ;;  %v115_v27 = vld [vmem:[#allocation0 + $0x11] ss:$24 sm:$0xf]   ;;  %s222_s2 = smov 24  }
  0x12   :  { %110 = vrot.lane.b32.xlu0 %v109_v20, %s215_s13  ;;  %130 = vrot.lane.b32.xlu1 %v129_v21, %s216_s14  ;;  %95 = vst [vmem:[#allocation0 + $0x8] sm:$0xf] %v206_v17  ;;  %v119_v30 = vsel %vm100_vm0, %v117_v26, %v115_v27  ;;  %vm132_vm4 = vcmask 458112   ;;  %vm142_vm5 = vcmask 392512   ;;  %vm152_vm6 = vcmask 326912  }
  0x13   :  { %15 = vst [vmem:[#allocation0 + $0xa8] sm:$0xf] %v186_v22  ;;  %vm162_vm7 = vcmask 261312   ;;  %vm172_vm8 = vcmask 195712   ;;  %vm182_vm9 = vcmask 130112  }
  0x14   :  { %27 = vst [vmem:[#allocation0 + $0x90] sm:$0xf] %v189_v23  ;;  %v137_v33 = vld [vmem:[#allocation0 + $0xa] ss:$24 sm:$0xf0]  }
  0x15   :  { %39 = vst [vmem:[#allocation0 + $0x78] sm:$0xf] %v192_v24  ;;  %v147_v34 = vld [vmem:[#allocation0 + $0x9] ss:$24 sm:$0xf0]  }
  0x16   :  { %51 = vst [vmem:[#allocation0 + $0x60] sm:$0xf] %v195_v25  ;;  %v157_v40 = vld [vmem:[#allocation0 + $0x8] ss:$24 sm:$0xf0]  }
  0x17   :  { %63 = vst [vmem:[#allocation0 + $0x48] sm:$0xf] %v198_v28 }
  0x18   :  { %75 = vst [vmem:[#allocation0 + $0x30] sm:$0xf] %v201_v29 }
  0x19   :  { %v135_v35 = vld [vmem:[#allocation0 + $0xa] ss:$24 sm:$0xf]   ;;  %87 = vst [vmem:[#allocation0 + $0x18] sm:$0xf] %v204_v31 }
  0x1a   :  { %120 = vrot.lane.b32.xlu0 %v119_v30, %s217_s0  ;;  %v139_v36 = vsel %vm100_vm0, %v137_v33, %v135_v35  ;;  %97 = vst [vmem:[#allocation0] sm:$0xf] %v96_v32  ;;  %v145_v37 = vld [vmem:[#allocation0 + $0x9] ss:$24 sm:$0xf]  }
  0x1b   :  { %140 = vrot.lane.b32.xlu1 %v139_v36, %s218_s27  ;;  %v149_v38 = vsel %vm100_vm0, %v147_v34, %v145_v37  ;;  %v155_v39 = vld [vmem:[#allocation0 + $0x8] ss:$24 sm:$0xf]  }
  0x1c   :  { %150 = vrot.lane.b32.xlu2 %v149_v38, %s219_s28  ;;  %v159_v46 = vsel %vm100_vm0, %v157_v40, %v155_v39 }
  0x1d   :  { %v167_v41 = vld [vmem:[#allocation0 + $0x2] ss:$24 sm:$0xf0]   ;;  %v177_v42 = vld [vmem:[#allocation0 + $0x1] ss:$24 sm:$0xf0]  }
  0x1e   :  { %v99_v43 = vld [vmem:[#allocation0] ss:$24 sm:$0xf0]  }
  0x21   :  { %v165_v44 = vld [vmem:[#allocation0 + $0x2] ss:$24 sm:$0xf]   ;;  %v175_v45 = vld [vmem:[#allocation0 + $0x1] ss:$24 sm:$0xf]  }
  0x22   :  { %v169_v47 = vsel %vm100_vm0, %v167_v41, %v165_v44  ;;  %v179_v48 = vsel %vm100_vm0, %v177_v42, %v175_v45  ;;  %v98_v49 = vld [vmem:[#allocation0] ss:$24 sm:$0xf]  }
  0x23   :  { %170 = vrot.lane.b32.xlu0 %v169_v47, %s220_s29  ;;  %180 = vrot.lane.b32.xlu1 %v179_v48, %s221_s30  ;;  %v101_v50 = vsel %vm100_vm0, %v99_v43, %v98_v49 }
  0x24   :  { %160 = vrot.lane.b32.xlu2 %v159_v46, %s222_s2  ;;  %103 = vst.msk [vmem:[%s342_s1] sm:$0xff] %vm102_vm1, %v101_v50  }
  0x76   :  { %v151_v51 = vpop.permute.xlu2 %150  }
  0x7e   :  { %v161_v52 = vpop.permute.xlu2 %160  }
  0x84   :  { %v111_v53 = vpop.permute.xlu0 %110   ;;  %v131_v54 = vpop.permute.xlu1 %130  }
  0x85   :  { %113 = vst.msk [vmem:[%s342_s1] sm:$0xff] %vm112_vm2, %v111_v53  }
  0x8c   :  { %v121_v55 = vpop.permute.xlu0 %120  }
  0x8d   :  { %123 = vst.msk [vmem:[%s342_s1] sm:$0xff] %vm122_vm3, %v121_v55   ;;  %v141_v56 = vpop.permute.xlu1 %140  }
  0x8e   :  { %133 = vst.msk [vmem:[%s342_s1] sm:$0xff] %vm132_vm4, %v131_v54  }
  0x8f   :  { %143 = vst.msk [vmem:[%s342_s1] sm:$0xff] %vm142_vm5, %v141_v56  }
  0x90   :  { %153 = vst.msk [vmem:[%s342_s1] sm:$0xff] %vm152_vm6, %v151_v51  }
  0x91   :  { %163 = vst.msk [vmem:[%s342_s1] sm:$0xff] %vm162_vm7, %v161_v52  }
  0x95   :  { %v171_v57 = vpop.permute.xlu0 %170   ;;  %v181_v58 = vpop.permute.xlu1 %180  }
  0x96   :  { %173 = vst.msk [vmem:[%s342_s1] sm:$0xff] %vm172_vm8, %v171_v57  }
  0x97   :  { %183 = vst.msk [vmem:[%s342_s1] sm:$0xff] %vm182_vm9, %v181_v58  }

// kernel: conv_block_forward.4
= control target key start
LH: loop header
LB: loop body
LE: loop exit
PB: predicated region body
PF: predicated region fallthrough
CT: control target
= control target key end

     0   :  { %s846_s15 = smov 0   ;;  %s848_s16 = smov 0   ;;  %s1361_s0 = inlined_call_operand.vmem [shape: f32[32,1152], index: 0, kind: input, shape index: {}]   ;;  %s1362_s1 = inlined_call_operand.vmem [shape: f32[1152,128], index: 1, kind: input, shape index: {}]   ;;  %s1363_s2 = inlined_call_operand.vmem [shape: f32[1,128], index: 2, kind: input, shape index: {}]   ;;  %s1364_s3 = inlined_call_operand.vmem [shape: f32[32,128], index: 3, kind: output, shape index: {0}]   ;;  %s1365_s4 = inlined_call_operand.vmem [shape: f32[2,2,128], index: 4, kind: output, shape index: {1}]  }
   0x1   :  { %s850_s17 = smov 0  }
   0x2 LB: > { %s27_s18 = sadd.s32 1, %s814_s16  ;;  %p745_p0 = scmp.ge.s32.totalorder %s818_s17, 1  ;;  %s818_s17 = sphi %s850_s17, %s15_s17   ;;  %s814_s16 = sphi %s848_s16, %s1368_s16   ;;  %s810_s15 = sphi %s846_s15, %s1367_s15  }
   0x3   : > { %p29_p1 = scmp.ge.s32.totalorder %s27_s18, 2  ;;  %p185_p2 = scmp.lt.s32.totalorder %s818_s17, 3 }
   0x5   : > { %s1370_s18 = smov (%p29_p1, %s27_s18), 0  ;;  %p186_p3 = pnand %p745_p0, %p185_p2 }
   0x6   : > { %s746_s9 = sshll.u32 (!%p186_p3), %s810_s15, 1  ;;  %p235_p5 = scmp.lt.s32.totalorder (!%p186_p3), %s810_s15, 1 }
   0x7   : > { %189 = sbr.rel (%p186_p3) target bundleno = 262 (0x106), region = 32  ;;  %p1076_p4 = scmp.lt.s32.totalorder (!%p186_p3), %s746_s9, 3 }
   0xc   : > { %v277_v0 = vld [vmem:[%s1362_s1 + $0x78] sm:$0xff]  ;;  %v276_v2 = vld [vmem:[%s1362_s1 + $0x70] sm:$0xff]  ;;  %v275_v5 = vld [vmem:[%s1362_s1 + $0x68] sm:$0xff]  ;;  %s1372_s9 = smov (!%p1076_p4, %s746_s9), 3  ;;  %s1374_s15 = smov (!%p235_p5, %s810_s15), 1  ;;  %vm638_vm0 = vcmask 1040384  }
   0xd   : > { %v293_v1 = vld [vmem:[%s1362_s1 + $0xf8] sm:$0xff]  ;;  %410 = vmatpush.msra.mxu0 %v277_v0  ;;  %v292_v3 = vld [vmem:[%s1362_s1 + $0xf0] sm:$0xff]  ;;  %v291_v6 = vld [vmem:[%s1362_s1 + $0xe8] sm:$0xff]  ;;  %s769_s13 = smul.u32 72, %s1372_s9  ;;  %s750_s21 = sshll.u32 %s1374_s15, 1 }
   0xe   : > { %433 = vmatpush.msra.mxu1 %v293_v1  ;;  %v309_v4 = vld [vmem:[%s1362_s1 + $0x178] sm:$0xff]  ;;  %v308_v7 = vld [vmem:[%s1362_s1 + $0x170] sm:$0xff]  ;;  %v307_v9 = vld [vmem:[%s1362_s1 + $0x168] sm:$0xff]  ;;  %s749_s15 = sshll.u32 %s1372_s9, 3 }
   0xf   : > { %456 = vmatpush.msra.mxu2 %v309_v4  ;;  %v325_v8 = vld [vmem:[%s1362_s1 + $0x1f8] sm:$0xff]  ;;  %411 = vmatpush.msra.mxu0 %v276_v2  ;;  %v274_v10 = vld [vmem:[%s1362_s1 + $0x60] sm:$0xff]  ;;  %v324_v12 = vld [vmem:[%s1362_s1 + $0x1f0] sm:$0xff]  ;;  %s1162_s11 = scalar_lea.vmem %s1361_s0, %s769_s13  ;;  %s1343_s13 = scalar_lea.vmem %s1365_s4, %s750_s21 }
  0x10   : > { %434 = vmatpush.msra.mxu1 %v292_v3  ;;  %479 = vmatpush.msra.mxu3 %v325_v8  ;;  %v290_v11 = vld [vmem:[%s1362_s1 + $0xe0] sm:$0xff]  ;;  %v323_v14 = vld [vmem:[%s1362_s1 + $0x1e8] sm:$0xff]  ;;  %v273_v15 = vld [vmem:[%s1362_s1 + $0x58] sm:$0xff]  ;;  %s232_s25 = scalar_lea.vmem %s1364_s3, %s749_s15 }
  0x11   : > { %457 = vmatpush.msra.mxu2 %v308_v7  ;;  %412 = vmatpush.msra.mxu0 %v275_v5  ;;  %v306_v13 = vld [vmem:[%s1362_s1 + $0x160] sm:$0xff]  ;;  %v289_v16 = vld [vmem:[%s1362_s1 + $0xd8] sm:$0xff]  ;;  %v272_v19 = vld [vmem:[%s1362_s1 + $0x50] sm:$0xff] }
  0x12   : > { %435 = vmatpush.msra.mxu1 %v291_v6  ;;  %480 = vmatpush.msra.mxu3 %v324_v12  ;;  %v305_v17 = vld [vmem:[%s1362_s1 + $0x158] sm:$0xff]  ;;  %v322_v18 = vld [vmem:[%s1362_s1 + $0x1e0] sm:$0xff]  ;;  %v288_v20 = vld [vmem:[%s1362_s1 + $0xd0] sm:$0xff] }
  0x13   : > { %458 = vmatpush.msra.mxu2 %v307_v9  ;;  %413 = vmatpush.msra.mxu0 %v274_v10  ;;  %v304_v21 = vld [vmem:[%s1362_s1 + $0x150] sm:$0xff]  ;;  %v321_v22 = vld [vmem:[%s1362_s1 + $0x1d8] sm:$0xff]  ;;  %v271_v23 = vld [vmem:[%s1362_s1 + $0x48] sm:$0xff] }
  0x14   : > { %436 = vmatpush.msra.mxu1 %v290_v11  ;;  %481 = vmatpush.msra.mxu3 %v323_v14  ;;  %v287_v24 = vld [vmem:[%s1362_s1 + $0xc8] sm:$0xff]  ;;  %v320_v26 = vld [vmem:[%s1362_s1 + $0x1d0] sm:$0xff]  ;;  %v270_v27 = vld [vmem:[%s1362_s1 + $0x40] sm:$0xff] }
  0x15   : > { %459 = vmatpush.msra.mxu2 %v306_v13  ;;  %414 = vmatpush.msra.mxu0 %v273_v15  ;;  %v303_v25 = vld [vmem:[%s1362_s1 + $0x148] sm:$0xff]  ;;  %v286_v28 = vld [vmem:[%s1362_s1 + $0xc0] sm:$0xff]  ;;  %v269_v31 = vld [vmem:[%s1362_s1 + $0x38] sm:$0xff] }
  0x16   : > { %437 = vmatpush.msra.mxu1 %v289_v16  ;;  %482 = vmatpush.msra.mxu3 %v322_v18  ;;  %v302_v29 = vld [vmem:[%s1362_s1 + $0x140] sm:$0xff]  ;;  %v319_v30 = vld [vmem:[%s1362_s1 + $0x1c8] sm:$0xff]  ;;  %v285_v32 = vld [vmem:[%s1362_s1 + $0xb8] sm:$0xff] }
  0x17   : > { %460 = vmatpush.msra.mxu2 %v305_v17  ;;  %415 = vmatpush.msra.mxu0 %v272_v19  ;;  %v301_v33 = vld [vmem:[%s1362_s1 + $0x138] sm:$0xff]  ;;  %v318_v34 = vld [vmem:[%s1362_s1 + $0x1c0] sm:$0xff]  ;;  %v268_v35 = vld [vmem:[%s1362_s1 + $0x30] sm:$0xff] }
  0x18   : > { %438 = vmatpush.msra.mxu1 %v288_v20  ;;  %483 = vmatpush.msra.mxu3 %v321_v22  ;;  %v284_v36 = vld [vmem:[%s1362_s1 + $0xb0] sm:$0xff]  ;;  %v317_v38 = vld [vmem:[%s1362_s1 + $0x1b8] sm:$0xff]  ;;  %v267_v39 = vld [vmem:[%s1362_s1 + $0x28] sm:$0xff] }
  0x19   : > { %461 = vmatpush.msra.mxu2 %v304_v21  ;;  %416 = vmatpush.msra.mxu0 %v271_v23  ;;  %v300_v37 = vld [vmem:[%s1362_s1 + $0x130] sm:$0xff]  ;;  %v283_v40 = vld [vmem:[%s1362_s1 + $0xa8] sm:$0xff]  ;;  %v266_v43 = vld [vmem:[%s1362_s1 + $0x20] sm:$0xff] }
  0x1a   : > { %439 = vmatpush.msra.mxu1 %v287_v24  ;;  %484 = vmatpush.msra.mxu3 %v320_v26  ;;  %v299_v41 = vld [vmem:[%s1362_s1 + $0x128] sm:$0xff]  ;;  %v316_v42 = vld [vmem:[%s1362_s1 + $0x1b0] sm:$0xff]  ;;  %v282_v44 = vld [vmem:[%s1362_s1 + $0xa0] sm:$0xff] }
  0x1b   : > { %462 = vmatpush.msra.mxu2 %v303_v25  ;;  %417 = vmatpush.msra.mxu0 %v270_v27  ;;  %v298_v45 = vld [vmem:[%s1362_s1 + $0x120] sm:$0xff]  ;;  %v315_v46 = vld [vmem:[%s1362_s1 + $0x1a8] sm:$0xff]  ;;  %v265_v47 = vld [vmem:[%s1362_s1 + $0x18] sm:$0xff] }
  0x1c   : > { %440 = vmatpush.msra.mxu1 %v286_v28  ;;  %485 = vmatpush.msra.mxu3 %v319_v30  ;;  %v281_v48 = vld [vmem:[%s1362_s1 + $0x98] sm:$0xff]  ;;  %v314_v50 = vld [vmem:[%s1362_s1 + $0x1a0] sm:$0xff]  ;;  %v264_v51 = vld [vmem:[%s1362_s1 + $0x10] sm:$0xff] }
  0x1d   : > { %463 = vmatpush.msra.mxu2 %v302_v29  ;;  %418 = vmatpush.msra.mxu0 %v269_v31  ;;  %v297_v49 = vld [vmem:[%s1362_s1 + $0x118] sm:$0xff]  ;;  %v280_v52 = vld [vmem:[%s1362_s1 + $0x90] sm:$0xff]  ;;  %v263_v55 = vld [vmem:[%s1362_s1 + $0x8] sm:$0xff] }
  0x1e   : > { %441 = vmatpush.msra.mxu1 %v285_v32  ;;  %486 = vmatpush.msra.mxu3 %v318_v34  ;;  %v296_v53 = vld [vmem:[%s1362_s1 + $0x110] sm:$0xff]  ;;  %v313_v54 = vld [vmem:[%s1362_s1 + $0x198] sm:$0xff]  ;;  %v279_v56 = vld [vmem:[%s1362_s1 + $0x88] sm:$0xff] }
  0x1f   : > { %464 = vmatpush.msra.mxu2 %v301_v33  ;;  %419 = vmatpush.msra.mxu0 %v268_v35  ;;  %v295_v57 = vld [vmem:[%s1362_s1 + $0x108] sm:$0xff]  ;;  %v312_v58 = vld [vmem:[%s1362_s1 + $0x190] sm:$0xff]  ;;  %v262_v59 = vld [vmem:[%s1362_s1] sm:$0xff] }
  0x20   : > { %442 = vmatpush.msra.mxu1 %v284_v36  ;;  %487 = vmatpush.msra.mxu3 %v317_v38  ;;  %v278_v60 = vld [vmem:[%s1362_s1 + $0x80] sm:$0xff]  ;;  %v341_v61 = vld [vmem:[%s1362_s1 + $0x278] sm:$0xff]  ;;  %v311_v0 = vld [vmem:[%s1362_s1 + $0x188] sm:$0xff] }
  0x21   : > { %465 = vmatpush.msra.mxu2 %v300_v37  ;;  %420 = vmatpush.msra.mxu0 %v267_v39  ;;  %v357_v62 = vld [vmem:[%s1362_s1 + $0x2f8] sm:$0xff]  ;;  %v294_v63 = vld [vmem:[%s1362_s1 + $0x100] sm:$0xff]  ;;  %v340_v1 = vld [vmem:[%s1362_s1 + $0x270] sm:$0xff] }
  0x22   : > { %443 = vmatpush.msra.mxu1 %v283_v40  ;;  %488 = vmatpush.msra.mxu3 %v316_v42  ;;  %v356_v2 = vld [vmem:[%s1362_s1 + $0x2f0] sm:$0xff]  ;;  %v373_v3 = vld [vmem:[%s1362_s1 + $0x378] sm:$0xff]  ;;  %v310_v4 = vld [vmem:[%s1362_s1 + $0x180] sm:$0xff] }
  0x23   : > { %466 = vmatpush.msra.mxu2 %v299_v41  ;;  %421 = vmatpush.msra.mxu0 %v266_v43  ;;  %v339_v5 = vld [vmem:[%s1362_s1 + $0x268] sm:$0xff]  ;;  %v372_v7 = vld [vmem:[%s1362_s1 + $0x370] sm:$0xff]  ;;  %v389_v8 = vld [vmem:[%s1362_s1 + $0x3f8] sm:$0xff] }
  0x24   : > { %444 = vmatpush.msra.mxu1 %v282_v44  ;;  %489 = vmatpush.msra.mxu3 %v315_v46  ;;  %v355_v6 = vld [vmem:[%s1362_s1 + $0x2e8] sm:$0xff]  ;;  %v338_v9 = vld [vmem:[%s1362_s1 + $0x260] sm:$0xff]  ;;  %v388_v12 = vld [vmem:[%s1362_s1 + $0x3f0] sm:$0xff] }
  0x25   : > { %467 = vmatpush.msra.mxu2 %v298_v45  ;;  %422 = vmatpush.msra.mxu0 %v265_v47  ;;  %v354_v10 = vld [vmem:[%s1362_s1 + $0x2e0] sm:$0xff]  ;;  %v371_v11 = vld [vmem:[%s1362_s1 + $0x368] sm:$0xff]  ;;  %v337_v13 = vld [vmem:[%s1362_s1 + $0x258] sm:$0xff] }
  0x26   : > { %445 = vmatpush.msra.mxu1 %v281_v48  ;;  %490 = vmatpush.msra.mxu3 %v314_v50  ;;  %v353_v14 = vld [vmem:[%s1362_s1 + $0x2d8] sm:$0xff]  ;;  %v370_v15 = vld [vmem:[%s1362_s1 + $0x360] sm:$0xff]  ;;  %v387_v16 = vld [vmem:[%s1362_s1 + $0x3e8] sm:$0xff] }
  0x27   : > { %468 = vmatpush.msra.mxu2 %v297_v49  ;;  %423 = vmatpush.msra.mxu0 %v264_v51  ;;  %v336_v17 = vld [vmem:[%s1362_s1 + $0x250] sm:$0xff]  ;;  %v369_v19 = vld [vmem:[%s1362_s1 + $0x358] sm:$0xff]  ;;  %v386_v20 = vld [vmem:[%s1362_s1 + $0x3e0] sm:$0xff] }
  0x28   : > { %446 = vmatpush.msra.mxu1 %v280_v52  ;;  %491 = vmatpush.msra.mxu3 %v313_v54  ;;  %v352_v18 = vld [vmem:[%s1362_s1 + $0x2d0] sm:$0xff]  ;;  %v335_v21 = vld [vmem:[%s1362_s1 + $0x248] sm:$0xff]  ;;  %v385_v24 = vld [vmem:[%s1362_s1 + $0x3d8] sm:$0xff] }
  0x29   : > { %469 = vmatpush.msra.mxu2 %v296_v53  ;;  %424 = vmatpush.msra.mxu0 %v263_v55  ;;  %v351_v22 = vld [vmem:[%s1362_s1 + $0x2c8] sm:$0xff]  ;;  %v368_v23 = vld [vmem:[%s1362_s1 + $0x350] sm:$0xff]  ;;  %v334_v25 = vld [vmem:[%s1362_s1 + $0x240] sm:$0xff] }
  0x2a   : > { %447 = vmatpush.msra.mxu1 %v279_v56  ;;  %492 = vmatpush.msra.mxu3 %v312_v58  ;;  %v350_v26 = vld [vmem:[%s1362_s1 + $0x2c0] sm:$0xff]  ;;  %v367_v27 = vld [vmem:[%s1362_s1 + $0x348] sm:$0xff]  ;;  %v384_v28 = vld [vmem:[%s1362_s1 + $0x3d0] sm:$0xff] }
  0x2b   : > { %470 = vmatpush.msra.mxu2 %v295_v57  ;;  %425 = vmatpush.msra.mxu0 %v262_v59  ;;  %v333_v29 = vld [vmem:[%s1362_s1 + $0x238] sm:$0xff]  ;;  %v366_v31 = vld [vmem:[%s1362_s1 + $0x340] sm:$0xff]  ;;  %v383_v32 = vld [vmem:[%s1362_s1 + $0x3c8] sm:$0xff] }
  0x2c   : > { %448 = vmatpush.msra.mxu1 %v278_v60  ;;  %493 = vmatpush.msra.mxu3 %v311_v0  ;;  %v349_v30 = vld [vmem:[%s1362_s1 + $0x2b8] sm:$0xff]  ;;  %v246_v33 = vld [vmem:[%s1162_s11 + $0x10] sm:$0xff]  ;;  %v382_v37 = vld [vmem:[%s1362_s1 + $0x3c0] sm:$0xff] }
  0x2d   : > { %502 = vmatpush.msrb.mxu0 %v341_v61  ;;  %471 = vmatpush.msra.mxu2 %v294_v63  ;;  %v332_v34 = vld [vmem:[%s1362_s1 + $0x230] sm:$0xff]  ;;  %v365_v36 = vld [vmem:[%s1362_s1 + $0x338] sm:$0xff]  ;;  %v244_v38 = vld [vmem:[%s1162_s11] sm:$0xff] }
  0x2e   : > { %525 = vmatpush.msrb.mxu1 %v357_v62  ;;  %494 = vmatpush.msra.mxu3 %v310_v4  ;;  %v348_v35 = vld [vmem:[%s1362_s1 + $0x2b0] sm:$0xff]  ;;  %v247_v39 = vld [vmem:[%s1162_s11 + $0x18] sm:$0xff]  ;;  %v331_v40 = vld [vmem:[%s1362_s1 + $0x228] sm:$0xff] }
  0x2f   : > { %503 = vmatpush.msrb.mxu0 %v340_v1  ;;  %548 = vmatpush.msrb.mxu2 %v373_v3  ;;  %v347_v41 = vld [vmem:[%s1362_s1 + $0x2a8] sm:$0xff]  ;;  %v364_v42 = vld [vmem:[%s1362_s1 + $0x330] sm:$0xff]  ;;  %v381_v43 = vld [vmem:[%s1362_s1 + $0x3b8] sm:$0xff] }
  0x30   : > { %526 = vmatpush.msrb.mxu1 %v356_v2  ;;  %571 = vmatpush.msrb.mxu3 %v389_v8  ;;  %v245_v44 = vld [vmem:[%s1162_s11 + $0x8] sm:$0xff]  ;;  %v330_v45 = vld [vmem:[%s1362_s1 + $0x220] sm:$0xff]  ;;  %v380_v48 = vld [vmem:[%s1362_s1 + $0x3b0] sm:$0xff] }
  0x31   : > { %504 = vmatpush.msrb.mxu0 %v339_v5  ;;  %549 = vmatpush.msrb.mxu2 %v372_v7  ;;  %v346_v46 = vld [vmem:[%s1362_s1 + $0x2a0] sm:$0xff]  ;;  %v363_v47 = vld [vmem:[%s1362_s1 + $0x328] sm:$0xff]  ;;  %v329_v49 = vld [vmem:[%s1362_s1 + $0x218] sm:$0xff] }
  0x32   : > { %527 = vmatpush.msrb.mxu1 %v355_v6  ;;  %572 = vmatpush.msrb.mxu3 %v388_v12  ;;  %v345_v50 = vld [vmem:[%s1362_s1 + $0x298] sm:$0xff]  ;;  %v362_v51 = vld [vmem:[%s1362_s1 + $0x320] sm:$0xff]  ;;  %v379_v52 = vld [vmem:[%s1362_s1 + $0x3a8] sm:$0xff] }
  0x33   : > { %505 = vmatpush.msrb.mxu0 %v338_v9  ;;  %550 = vmatpush.msrb.mxu2 %v371_v11  ;;  %v255_v53 = vld [vmem:[%s1162_s11 + $0x58] sm:$0xff]  ;;  %v328_v54 = vld [vmem:[%s1362_s1 + $0x210] sm:$0xff]  ;;  %v378_v57 = vld [vmem:[%s1362_s1 + $0x3a0] sm:$0xff] }
  0x34   : > { %528 = vmatpush.msrb.mxu1 %v354_v10  ;;  %573 = vmatpush.msrb.mxu3 %v387_v16  ;;  %v344_v55 = vld [vmem:[%s1362_s1 + $0x290] sm:$0xff]  ;;  %v361_v56 = vld [vmem:[%s1362_s1 + $0x318] sm:$0xff]  ;;  %v253_v58 = vld [vmem:[%s1162_s11 + $0x48] sm:$0xff] }
  0x35   : > { %506 = vmatpush.msrb.mxu0 %v337_v13  ;;  %551 = vmatpush.msrb.mxu2 %v370_v15  ;;  %v256_v59 = vld [vmem:[%s1162_s11 + $0x60] sm:$0xff]  ;;  %v327_v60 = vld [vmem:[%s1362_s1 + $0x208] sm:$0xff]  ;;  %v360_v62 = vld [vmem:[%s1362_s1 + $0x310] sm:$0xff] }
  0x36   : > { %529 = vmatpush.msrb.mxu1 %v353_v14  ;;  %574 = vmatpush.msrb.mxu3 %v386_v20  ;;  %v343_v61 = vld [vmem:[%s1362_s1 + $0x288] sm:$0xff]  ;;  %v377_v63 = vld [vmem:[%s1362_s1 + $0x398] sm:$0xff]  ;;  %v254_v0 = vld [vmem:[%s1162_s11 + $0x50] sm:$0xff] }
  0x37   : > { %507 = vmatpush.msrb.mxu0 %v336_v17  ;;  %552 = vmatpush.msrb.mxu2 %v369_v19  ;;  %v326_v1 = vld [vmem:[%s1362_s1 + $0x200] sm:$0xff]  ;;  %v359_v3 = vld [vmem:[%s1362_s1 + $0x308] sm:$0xff]  ;;  %v376_v4 = vld [vmem:[%s1362_s1 + $0x390] sm:$0xff] }
  0x38   : > { %530 = vmatpush.msrb.mxu1 %v352_v18  ;;  %575 = vmatpush.msrb.mxu3 %v385_v24  ;;  %v342_v2 = vld [vmem:[%s1362_s1 + $0x280] sm:$0xff]  ;;  %v405_v5 = vld [vmem:[%s1362_s1 + $0x478] sm:$0xff]  ;;  %v375_v7 = vld [vmem:[%s1362_s1 + $0x388] sm:$0xff] }
  0x39   : > { %508 = vmatpush.msrb.mxu0 %v335_v21  ;;  %553 = vmatpush.msrb.mxu2 %v368_v23  ;;  %v358_v6 = vld [vmem:[%s1362_s1 + $0x300] sm:$0xff]  ;;  %v404_v8 = vld [vmem:[%s1362_s1 + $0x470] sm:$0xff]  ;;  %v403_v11 = vld [vmem:[%s1362_s1 + $0x468] sm:$0xff] }
  0x3a   : > { %531 = vmatpush.msrb.mxu1 %v351_v22  ;;  %576 = vmatpush.msrb.mxu3 %v384_v28  ;;  %v250_v9 = vld [vmem:[%s1162_s11 + $0x30] sm:$0xff]  ;;  %v374_v10 = vld [vmem:[%s1362_s1 + $0x380] sm:$0xff]  ;;  %v251_v13 = vld [vmem:[%s1162_s11 + $0x38] sm:$0xff] }
  0x3b   : > { %509 = vmatpush.msrb.mxu0 %v334_v25  ;;  %554 = vmatpush.msrb.mxu2 %v367_v27  ;;  %v248_v12 = vld [vmem:[%s1162_s11 + $0x20] sm:$0xff]  ;;  %v249_v15 = vld [vmem:[%s1162_s11 + $0x28] sm:$0xff]  ;;  %v401_v16 = vld [vmem:[%s1362_s1 + $0x458] sm:$0xff] }
  0x3c   : > { %532 = vmatpush.msrb.mxu1 %v350_v26  ;;  %577 = vmatpush.msrb.mxu3 %v383_v32  ;;  %v402_v14 = vld [vmem:[%s1362_s1 + $0x460] sm:$0xff]  ;;  %v400_v17 = vld [vmem:[%s1362_s1 + $0x450] sm:$0xff]  ;;  %v259_v18 = vld [vmem:[%s1162_s11 + $0x78] sm:$0xff] }
  0x3d   : > { %510 = vmatpush.msrb.mxu0 %v333_v29  ;;  %555 = vmatpush.msrb.mxu2 %v366_v31  ;;  %v399_v19 = vld [vmem:[%s1362_s1 + $0x448] sm:$0xff]  ;;  %v260_v21 = vld [vmem:[%s1162_s11 + $0x80] sm:$0xff]  ;;  %v258_v23 = vld [vmem:[%s1162_s11 + $0x70] sm:$0xff] }
  0x3e   : > { %533 = vmatpush.msrb.mxu1 %v349_v30  ;;  %472 = vmatmul.f32.vlgmr.msra.gmra.mxu2 %v246_v33  ;;  %v257_v20 = vld [vmem:[%s1162_s11 + $0x68] sm:$0xff]  ;;  %v398_v22 = vld [vmem:[%s1362_s1 + $0x440] sm:$0xff]  ;;  %v397_v24 = vld [vmem:[%s1362_s1 + $0x438] sm:$0xff] }
  0x3f   : > { %511 = vmatpush.msrb.mxu0 %v332_v34  ;;  %556 = vmatpush.msrb.mxu2 %v365_v36  ;;  %v396_v25 = vld [vmem:[%s1362_s1 + $0x430] sm:$0xff]  ;;  %v395_v26 = vld [vmem:[%s1362_s1 + $0x428] sm:$0xff]  ;;  %v394_v27 = vld [vmem:[%s1362_s1 + $0x420] sm:$0xff] }
  0x40   : > { %534 = vmatpush.msrb.mxu1 %v348_v35  ;;  %578 = vmatpush.msrb.mxu3 %v382_v37  ;;  %v393_v28 = vld [vmem:[%s1362_s1 + $0x418] sm:$0xff]  ;;  %v392_v29 = vld [vmem:[%s1362_s1 + $0x410] sm:$0xff]  ;;  %v391_v30 = vld [vmem:[%s1362_s1 + $0x408] sm:$0xff] }
  0x41   : > { %426 = vmatmul.f32.vlgmr.msra.gmra.mxu0 %v244_v38  ;;  %495 = vmatmul.f32.vlgmr.msra.gmra.mxu3 %v247_v39  ;;  %v390_v31 = vld [vmem:[%s1362_s1 + $0x400] sm:$0xff]  ;;  %v261_v33 = vld [vmem:[%s1162_s11 + $0x88] sm:$0xff] }
  0x42   : > { %512 = vmatpush.msrb.mxu0 %v331_v40  ;;  %535 = vmatpush.msrb.mxu1 %v347_v41  ;;  %v252_v32 = vld [vmem:[%s1162_s11 + $0x40] sm:$0xff] }
  0x43   : > { %557 = vmatpush.msrb.mxu2 %v364_v42  ;;  %579 = vmatpush.msrb.mxu3 %v381_v43  ;;  %v795_v39 = vld [vmem:[%s1363_s2] ss:$0 sm:$0xff] }
  0x44   : > { %449 = vmatmul.f32.vlgmr.msra.gmra.mxu1 %v245_v44  ;;  %513 = vmatpush.msrb.mxu0 %v330_v45  ;;  %v820_v45 = vmov 0.0  }
  0x45   : > { %536 = vmatpush.msrb.mxu1 %v346_v46  ;;  %558 = vmatpush.msrb.mxu2 %v363_v47  ;;  %243 = vst [vmem:[%s1343_s13] sm:$0x3] %v820_v45 }
  0x46   : > { %580 = vmatpush.msrb.mxu3 %v380_v48  ;;  %514 = vmatpush.msrb.mxu0 %v329_v49 }
  0x47   : > { %537 = vmatpush.msrb.mxu1 %v345_v50  ;;  %559 = vmatpush.msrb.mxu2 %v362_v51 }
  0x48   : > { %581 = vmatpush.msrb.mxu3 %v379_v52  ;;  %475 = vmatmul.f32.gmra.mxu2 %v255_v53 }
  0x49   : > { %515 = vmatpush.msrb.mxu0 %v328_v54  ;;  %538 = vmatpush.msrb.mxu1 %v344_v55 }
  0x4a   : > { %560 = vmatpush.msrb.mxu2 %v361_v56  ;;  %582 = vmatpush.msrb.mxu3 %v378_v57 }
  0x4b   : > { %429 = vmatmul.f32.gmra.mxu0 %v253_v58  ;;  %498 = vmatmul.f32.gmra.mxu3 %v256_v59 }
  0x4c   : > { %516 = vmatpush.msrb.mxu0 %v327_v60  ;;  %539 = vmatpush.msrb.mxu1 %v343_v61 }
  0x4d   : > { %561 = vmatpush.msrb.mxu2 %v360_v62  ;;  %583 = vmatpush.msrb.mxu3 %v377_v63 }
  0x4e   : > { %452 = vmatmul.f32.gmra.mxu1 %v254_v0  ;;  %517 = vmatpush.msrb.mxu0 %v326_v1 }
  0x4f   : > { %540 = vmatpush.msrb.mxu1 %v342_v2  ;;  %562 = vmatpush.msrb.mxu2 %v359_v3 }
  0x50   : > { %584 = vmatpush.msrb.mxu3 %v376_v4  ;;  %594 = vmatpush.msra.mxu0 %v405_v5 }
  0x51   : > { %753 = vmatpush.msra.mxu1 %v405_v5  ;;  %563 = vmatpush.msrb.mxu2 %v358_v6 }
  0x52   : > { %585 = vmatpush.msrb.mxu3 %v375_v7  ;;  %595 = vmatpush.msra.mxu0 %v404_v8 }
  0x53   : > { %754 = vmatpush.msra.mxu1 %v404_v8  ;;  %564 = vmatmul.f32.vlgmr.msrb.gmra.mxu2 %v250_v9 }
  0x54   : > { %586 = vmatpush.msrb.mxu3 %v374_v10  ;;  %596 = vmatpush.msra.mxu0 %v403_v11 }
  0x55   : > { %755 = vmatpush.msra.mxu1 %v403_v11  ;;  %518 = vmatmul.f32.vlgmr.msrb.gmra.mxu0 %v248_v12 }
  0x56   : > { %587 = vmatmul.f32.vlgmr.msrb.gmra.mxu3 %v251_v13  ;;  %597 = vmatpush.msra.mxu0 %v402_v14 }
  0x57   : > { %756 = vmatpush.msra.mxu1 %v402_v14 }
  0x58   : > { %541 = vmatmul.f32.vlgmr.msrb.gmra.mxu1 %v249_v15  ;;  %598 = vmatpush.msra.mxu0 %v401_v16 }
  0x59   : > { %757 = vmatpush.msra.mxu1 %v401_v16 }
  0x5a   : > { %599 = vmatpush.msra.mxu0 %v400_v17 }
  0x5b   : > { %758 = vmatpush.msra.mxu1 %v400_v17  ;;  %567 = vmatmul.f32.gmra.mxu2 %v259_v18 }
  0x5c   : > { %600 = vmatpush.msra.mxu0 %v399_v19 }
  0x5d   : > { %759 = vmatpush.msra.mxu1 %v399_v19  ;;  %521 = vmatmul.f32.gmra.mxu0 %v257_v20 }
  0x5e   : > { %590 = vmatmul.f32.gmra.mxu3 %v260_v21  ;;  %601 = vmatpush.msra.mxu0 %v398_v22 }
  0x5f   : > { %760 = vmatpush.msra.mxu1 %v398_v22 }
  0x60   : > { %544 = vmatmul.f32.gmra.mxu1 %v258_v23  ;;  %602 = vmatpush.msra.mxu0 %v397_v24 }
  0x61   : > { %761 = vmatpush.msra.mxu1 %v397_v24 }
  0x62   : > { %603 = vmatpush.msra.mxu0 %v396_v25 }
  0x63   : > { %762 = vmatpush.msra.mxu1 %v396_v25 }
  0x64   : > { %604 = vmatpush.msra.mxu0 %v395_v26 }
  0x65   : > { %763 = vmatpush.msra.mxu1 %v395_v26  ;;  %v637_v26 = vld [vmem:[%s1343_s13] sm:$0x3] }
  0x66   : > { %605 = vmatpush.msra.mxu0 %v394_v27 }
  0x67   : > { %764 = vmatpush.msra.mxu1 %v394_v27 }
  0x68   : > { %606 = vmatpush.msra.mxu0 %v393_v28 }
  0x69   : > { %765 = vmatpush.msra.mxu1 %v393_v28 }
  0x6a   : > { %607 = vmatpush.msra.mxu0 %v392_v29 }
  0x6b   : > { %766 = vmatpush.msra.mxu1 %v392_v29 }
  0x6c   : > { %608 = vmatpush.msra.mxu0 %v391_v30 }
  0x6d   : > { %767 = vmatpush.msra.mxu1 %v391_v30 }
  0x6e   : > { %609 = vmatpush.msra.mxu0 %v390_v31 }
  0x6f   : > { %768 = vmatpush.msra.mxu1 %v390_v31  ;;  %610 = vmatmul.f32.vlgmr.msra.gmra.mxu0 %v252_v32 }
  0x70   : > { %613 = vmatmul.f32.vlgmr.msra.gmra.mxu1 %v261_v33 }
  0xbe   : > { %v427_v34 = vpop.f32.mrf.mxu0 }
  0xbf   : > { %v428_v41 = vadd.f32 %v795_v39, %v427_v34 }
  0xc1   : > { %v450_v35 = vpop.f32.mrf.mxu1  ;;  %v473_v36 = vpop.f32.mrf.mxu2 }
  0xc2   : > { %v451_v46 = vadd.f32 %v450_v35, %v428_v41 }
  0xc4   : > { %v496_v38 = vpop.f32.mrf.mxu3  ;;  %v474_v50 = vadd.f32 %v473_v36, %v451_v46 }
  0xc6   : > { %v497_v53 = vadd.f32 %v496_v38, %v474_v50 }
  0xc8   : > { %v430_v37 = vpop.f32.mrf.mxu0 }
  0xc9   : > { %v431_v42 = vadd.f32 %v795_v39, %v430_v37 }
  0xcb   : > { %v453_v40 = vpop.f32.mrf.mxu1  ;;  %v476_v43 = vpop.f32.mrf.mxu2 }
  0xcc   : > { %v454_v47 = vadd.f32 %v453_v40, %v431_v42 }
  0xce   : > { %v499_v48 = vpop.f32.mrf.mxu3  ;;  %v477_v51 = vadd.f32 %v476_v43, %v454_v47 }
  0xd0   : > { %v500_v54 = vadd.f32 %v499_v48, %v477_v51 }
  0xd2   : > { %v519_v44 = vpop.f32.mrf.mxu0 }
  0xd3   : > { %v520_v57 = vadd.f32 %v519_v44, %v497_v53 }
  0xd5   : > { %v542_v49 = vpop.f32.mrf.mxu1 }
  0xd6   : > { %v565_v52 = vpop.f32.mrf.mxu2  ;;  %v543_v60 = vadd.f32 %v542_v49, %v520_v57 }
  0xd8   : > { %v566_v63 = vadd.f32 %v565_v52, %v543_v60 }
  0xd9   : > { %v588_v56 = vpop.f32.mrf.mxu3 }
  0xda   : > { %v522_v55 = vpop.f32.mrf.mxu0  ;;  %v589_v2 = vadd.f32 %v588_v56, %v566_v63 }
  0xdb   : > { %v523_v58 = vadd.f32 %v522_v55, %v500_v54 }
  0xdd   : > { %v545_v59 = vpop.f32.mrf.mxu1 }
  0xde   : > { %v546_v61 = vadd.f32 %v545_v59, %v523_v58  ;;  %v568_v62 = vpop.f32.mrf.mxu2 }
  0xe0   : > { %v569_v0 = vadd.f32 %v568_v62, %v546_v61 }
  0xe1   : > { %v591_v1 = vpop.f32.mrf.mxu3 }
  0xe2   : > { %v592_v3 = vadd.f32 %v591_v1, %v569_v0 }
  0xec   : > { %v611_v4 = vpop.f32.mrf.mxu0 }
  0xed   : > { %v614_v5 = vpop.f32.mrf.mxu1  ;;  %v612_v6 = vadd.f32 %v611_v4, %v589_v2 }
  0xee   : > { %v615_v7 = vadd.f32 %v614_v5, %v592_v3 }
  0xef   : > { %v617_v8 = vmax.f32 %v612_v6, 0.0 }
  0xf0   : > { %v618_v9 = vmax.f32 %v615_v7, 0.0 }
  0xf1   : > { %619 = vst [vmem:[%s232_s25] sm:$0xff] %v617_v8  ;;  %v628_v10 = vmul.f32 %v617_v8, %v617_v8 }
  0xf2   : > { %v621_v11 = vadd.f32 %v618_v9, %v617_v8  ;;  %v629_v12 = vmul.f32 %v618_v9, %v618_v9  ;;  %620 = vst [vmem:[%s232_s25 + $0x8] sm:$0xff] %v618_v9 }
  0xf4   : > { %v622_v13 = vrot.slane %v621_v11, 4  ;;  %v630_v14 = vadd.f32 %v629_v12, %v628_v10 }
  0xf6   : > { %v623_v15 = vadd.f32 %v622_v13, %v621_v11  ;;  %v631_v16 = vrot.slane %v630_v14, 4 }
  0xf8   : > { %v624_v17 = vrot.slane %v623_v15, 2  ;;  %v632_v18 = vadd.f32 %v631_v16, %v630_v14 }
  0xfa   : > { %v625_v19 = vadd.f32 %v624_v17, %v623_v15  ;;  %v633_v20 = vrot.slane %v632_v18, 2 }
  0xfc   : > { %v626_v21 = vrot.slane %v625_v19, 1  ;;  %v634_v22 = vadd.f32 %v633_v20, %v632_v18 }
  0xfe   : > { %v635_v23 = vrot.slane %v634_v22, 1  ;;  %v627_v24 = vadd.f32 %v626_v21, %v625_v19 }
 0x100   : > { %v636_v25 = vadd.f32 %v635_v23, %v634_v22 }
 0x102   : > { %v639_v27 = vsel %vm638_vm0, %v627_v24, %v636_v25 }
 0x103   : > { %v640_v28 = vadd.f32 %v639_v27, %v637_v26 }
 0x105   : > { %641 = vst [vmem:[%s1343_s13] sm:$0x3] %v640_v28 }
 0x106 PF: > { %s15_s17 = sadd.s32 1, %s818_s17   ;;  %s1367_s15 = smov %s814_s16 }
 0x107   : > { %p12_p6 = scmp.ge.s32.totalorder %s15_s17, 4   ;;  %s1368_s16 = smov %s1370_s18 }
 0x109   :  { %14 = sbr.rel (!%p12_p6) target bundleno = 2 (0x2), region = 78 }

// kernel: conv_block_forward.5
= control target key start
LH: loop header
LB: loop body
LE: loop exit
PB: predicated region body
PF: predicated region fallthrough
CT: control target
= control target key end

     0   :  { %s271_s12 = smov 0   ;;  %s307_s0 = inlined_call_operand.vmem [shape: f32[32,128], index: 0, kind: input, shape index: {}]   ;;  %s308_s1 = inlined_call_operand.vmem [shape: f32[1,128], index: 1, kind: input, shape index: {}]   ;;  %s309_s2 = inlined_call_operand.vmem [shape: f32[1,128], index: 2, kind: input, shape index: {}]   ;;  %s310_s3 = inlined_call_operand.vmem [shape: f32[32,128], index: 3, kind: output, shape index: {}]  }
   0x1 LB: > { %s246_s13 = sadd.s32 4294967295, %s273_s12   ;;  %p250_p0 = scmp.ge.s32.totalorder %s273_s12, 1  ;;  %s273_s12 = sphi %s271_s12, %s13_s12  }
   0x2   : > { %p138_p1 = scmp.lt.s32.totalorder %s273_s12, 3 }
   0x4   : > { %p139_p2 = pnand %p250_p0, %p138_p1 }
   0x5   : > { %s251_s14 = sshll.u32 (!%p139_p2), %s246_s13, 1 }
   0x6   : > { %142 = sbr.rel (%p139_p2) target bundleno = 21 (0x15), region = 32  ;;  %p163_p3 = scmp.lt.s32.totalorder (!%p139_p2), %s251_s14, 3 }
   0xb   : > { %s312_s14 = smov (!%p163_p3, %s251_s14), 3  ;;  %v265_v0 = vld [vmem:[%s308_s1] ss:$0 sm:$0xff] }
   0xc   : > { %s252_s17 = sshll.u32 %s312_s14, 3  ;;  %v266_v1 = vld [vmem:[%s309_s2] ss:$0 sm:$0xff] }
   0xd   : > { %s166_s20 = scalar_lea.vmem %s307_s0, %s252_s17  ;;  %s172_s25 = scalar_lea.vmem %s310_s3, %s252_s17 }
   0xe   : > { %v174_v2 = vld [vmem:[%s166_s20] sm:$0xff]  ;;  %v175_v3 = vld [vmem:[%s166_s20 + $0x8] sm:$0xff] }
   0xf   : > { %v180_v4 = vmul.f32 %v265_v0, %v174_v2  ;;  %v181_v5 = vmul.f32 %v265_v0, %v175_v3 }
  0x11   : > { %v186_v6 = vadd.f32 %v266_v1, %v180_v4  ;;  %v187_v7 = vadd.f32 %v266_v1, %v181_v5 }
  0x13   : > { %188 = vst [vmem:[%s172_s25] sm:$0xff] %v186_v6 }
  0x14   : > { %189 = vst [vmem:[%s172_s25 + $0x8] sm:$0xff] %v187_v7 }
  0x15 PF: > { %s13_s12 = sadd.s32 1, %s273_s12  }
  0x16   : > { %p10_p4 = scmp.ge.s32.totalorder %s13_s12, 4  }
  0x18   :  { %12 = sbr.rel (!%p10_p4) target bundleno = 1 (0x1), region = 62 }

</bundles_post_ra>
